<compile_context>
chip_gen: v5e
topology: v5e:2x2
jax: 0.10.0
libtpu: 0.0.40
codegen_flags: <defaults>
</compile_context>

<pallas_src>
import functools

import jax
import jax.numpy as jnp
from jax.experimental import pallas as pl
from jax.experimental.pallas import tpu as pltpu

_LANE = 128  # TPU lane width; decoder output padded to this for dense stores.


def _lstm_forward_kernel(xf_ref, wih_ref, whh_ref, b_ref, wdec_ref, bdec_ref,
                         out_ref, x_proj_ref, h_all_ref, *,
                         n_input_steps, n_total_steps, batch, hidden_dim):
    """Whole forward pass in a single kernel invocation.

    xf_ref     : (n_input_steps * batch, D)   flattened input sequence
    wih_ref    : (D, 4H)   W_ih^T
    whh_ref    : (H, 4H)   W_hh^T
    b_ref      : (1, 4H)   b_ih + b_hh
    wdec_ref   : (H, P_pad)  W_dec^T, zero-padded to 128 lanes
    bdec_ref   : (1, P_pad)
    out_ref    : (n_total_steps * batch, P_pad)   lane-dense output
    x_proj_ref : (n_input_steps * batch, 4H)  VMEM scratch
    h_all_ref  : (n_total_steps * batch, H)   VMEM scratch
    """
    B, H = batch, hidden_dim

    whh = whh_ref[...]                                   # (H, 4H), kept resident
    bias = jnp.broadcast_to(b_ref[...], (B, 4 * H))      # only for padded steps

    # Hoisted input projection with the bias folded in.  Spilled to VMEM
    # scratch so the unrolled recurrence keeps O(1) vregs live.
    x_proj_ref[...] = (
        jnp.dot(xf_ref[...], wih_ref[...], preferred_element_type=jnp.float32)
        + b_ref[...])

    h = jnp.zeros((B, H), jnp.float32)
    c = jnp.zeros((B, H), jnp.float32)

    # Serial recurrence; T is small and static, so fully unroll it.
    # NOTE: whh could additionally be held resident in the MXU across steps
    # via pltpu.matmul_push_rhs / matmul_acc_lhs / matmul_pop; jnp.dot is kept
    # for portability (Mosaic hoists the constant RHS load out of the loop).
    for t in range(n_total_steps):
        gates = jnp.dot(h, whh, preferred_element_type=jnp.float32)
        if t < n_input_steps:                 # static (unrolled) condition
            gates = gates + x_proj_ref[pl.ds(t * B, B), :]   # bias already in
        else:                                  # zero-padded prediction step
            gates = gates + bias
        # Full-vreg transcendentals: one sigmoid + one tanh over all 4 gates.
        sig = jax.nn.sigmoid(gates)            # (B, 4H)
        tnh = jnp.tanh(gates)                  # (B, 4H)
        i_g = sig[:, 0 * H:1 * H]
        f_g = sig[:, 1 * H:2 * H]
        g_g = tnh[:, 2 * H:3 * H]
        o_g = sig[:, 3 * H:4 * H]
        c = f_g * c + i_g * g_g
        h = o_g * jnp.tanh(c)
        h_all_ref[pl.ds(t * B, B), :] = h      # aligned sublane store

    # Fused decoder: one (T*B, H) @ (H, 128) matmul + one dense output store.
    out = (jnp.dot(h_all_ref[...], wdec_ref[...],
                   preferred_element_type=jnp.float32) + bdec_ref[...])
    out_ref[...] = out.astype(out_ref.dtype)


def lstm_predict_pallas(x, w_ih, w_hh, b_ih, b_hh, w_dec, b_dec, *,
                        n_pred_steps):
    """x: (n_input_steps, B, D) float32.  Returns (T_total, B, P) float32."""
    T_in, B, D = x.shape
    H = w_hh.shape[1]            # torch layout: w_hh (4H, H)
    P = w_dec.shape[0]           # torch layout: w_dec (P, H)
    T_total = T_in + n_pred_steps

    # Pad batch up to the f32 sublane count (8).  Padded rows are zeros,
    # evolve independently in the LSTM, and are sliced off afterwards.
    B_pad = max(8, ((B + 7) // 8) * 8)
    if B_pad != B:
        x = jnp.concatenate(
            [x, jnp.zeros((T_in, B_pad - B, D), x.dtype)], axis=1)
    x_flat = x.reshape(T_in * B_pad, D)

    # Weight preprocessing.  In a real model these are constant across calls
    # and should be computed once and cached outside the per-call path.
    wih_t = jnp.transpose(w_ih)                  # (D, 4H)
    whh_t = jnp.transpose(w_hh)                  # (H, 4H)
    bias = (b_ih + b_hh).reshape(1, 4 * H)
    # Lane-dense decoder: zero-pad P -> multiple of 128 lanes.
    P_pad = max(_LANE, ((P + _LANE - 1) // _LANE) * _LANE)
    wdec_t = jnp.zeros((H, P_pad), jnp.float32).at[:, :P].set(
        jnp.transpose(w_dec))
    bdec = jnp.zeros((1, P_pad), jnp.float32).at[:, :P].set(b_dec)

    kernel = functools.partial(
        _lstm_forward_kernel,
        n_input_steps=T_in, n_total_steps=T_total,
        batch=B_pad, hidden_dim=H)

    # Advisory cost estimate so XLA schedules the tiny custom call sensibly.
    flops = 2 * (T_in * B_pad * D * 4 * H
                 + T_total * B_pad * H * 4 * H
                 + T_total * B_pad * H * P_pad)
    transcendentals = T_total * B_pad * 9 * H
    bytes_accessed = 4 * (x_flat.size + wih_t.size + whh_t.size + bias.size
                          + wdec_t.size + bdec.size + T_total * B_pad * P_pad)

    vmem = pl.BlockSpec(memory_space=pltpu.MemorySpace.VMEM)
    out_flat = pl.pallas_call(
        kernel,
        out_shape=jax.ShapeDtypeStruct((T_total * B_pad, P_pad), jnp.float32),
        in_specs=[vmem] * 6,
        out_specs=vmem,
        scratch_shapes=[
            pltpu.VMEM((T_in * B_pad, 4 * H), jnp.float32),    # x_proj
            pltpu.VMEM((T_total * B_pad, H), jnp.float32),     # h_all
        ],
        cost_estimate=pl.CostEstimate(
            flops=flops, transcendentals=transcendentals,
            bytes_accessed=bytes_accessed),
    )(x_flat, wih_t, whh_t, bias, wdec_t, bdec)

    out = out_flat.reshape(T_total, B_pad, P_pad)
    return out[:, :B, :P]


def timeseries_pred_forward(x, params, n_input_steps, n_pred_steps):
    """Equivalent of TimeSeriesPredModel.forward in 'async-many-to-many' mode.

    The explicit time-axis zero padding of the PyTorch module is folded into
    the kernel (padded steps simply skip the input projection).
    """
    assert x.shape[0] == n_input_steps
    return lstm_predict_pallas(x, *params, n_pred_steps=n_pred_steps)


# ---- pure-JAX reference (for correctness check only) ------------------------
def _reference_forward(x, params, n_input_steps, n_pred_steps):
    w_ih, w_hh, b_ih, b_hh, w_dec, b_dec = params
    B, D = x.shape[1], x.shape[2]
    H = w_hh.shape[1]
    x_padded = jnp.concatenate(
        (x, jnp.zeros((n_pred_steps, B, D), x.dtype)), axis=0)

    def step(carry, x_t):
        h, c = carry
        gates = x_t @ w_ih.T + h @ w_hh.T + b_ih + b_hh
        i = jax.nn.sigmoid(gates[:, 0 * H:1 * H])
        f = jax.nn.sigmoid(gates[:, 1 * H:2 * H])
        g = jnp.tanh(gates[:, 2 * H:3 * H])
        o = jax.nn.sigmoid(gates[:, 3 * H:4 * H])
        c = f * c + i * g
        h = o * jnp.tanh(c)
        return (h, c), h

    (_, _), hs = jax.lax.scan(
        step, (jnp.zeros((B, H)), jnp.zeros((B, H))), x_padded)
    return hs @ w_dec.T + b_dec


if __name__ == "__main__":
    # module config (small shapes consistent with the PyTorch module)
    input_feat_dim = 4
    pred_feat_dim = 4
    hidden_feat_dim = 32
    n_input_steps = 8
    n_pred_steps = 4
    batch = 2

    key = jax.random.PRNGKey(0)
    ks = jax.random.split(key, 8)
    bound = 1.0 / jnp.sqrt(hidden_feat_dim)   # PyTorch default LSTM init scale

    w_ih = jax.random.uniform(ks[0], (4 * hidden_feat_dim, input_feat_dim),
                              jnp.float32, -bound, bound)
    w_hh = jax.random.uniform(ks[1], (4 * hidden_feat_dim, hidden_feat_dim),
                              jnp.float32, -bound, bound)
    b_ih = jax.random.uniform(ks[2], (4 * hidden_feat_dim,),
                              jnp.float32, -bound, bound)
    b_hh = jax.random.uniform(ks[3], (4 * hidden_feat_dim,),
                              jnp.float32, -bound, bound)
    w_dec = jax.random.uniform(ks[4], (pred_feat_dim, hidden_feat_dim),
                               jnp.float32, -bound, bound)
    b_dec = jax.random.uniform(ks[5], (pred_feat_dim,),
                               jnp.float32, -bound, bound)
    params = (w_ih, w_hh, b_ih, b_hh, w_dec, b_dec)

    x = jax.random.normal(ks[6], (n_input_steps, batch, input_feat_dim),
                          jnp.float32)

    out = timeseries_pred_forward(x, params, n_input_steps, n_pred_steps)
    out = jax.block_until_ready(out)

    ref = _reference_forward(x, params, n_input_steps, n_pred_steps)
    assert out.shape == (n_input_steps + n_pred_steps, batch, pred_feat_dim)
    assert jnp.max(jnp.abs(out - ref)) < 1e-3, "mismatch vs JAX reference"

    print("KERNEL_OK")
</pallas_src>

<mosaic_0001>
module attributes {stable_mosaic.version = 11 : i64} {
  func.func @_lstm_forward_kernel(%arg0: memref<64x4xf32, #tpu.memory_space<vmem>>, %arg1: memref<4x128xf32, #tpu.memory_space<vmem>>, %arg2: memref<32x128xf32, #tpu.memory_space<vmem>>, %arg3: memref<1x128xf32, #tpu.memory_space<vmem>>, %arg4: memref<32x128xf32, #tpu.memory_space<vmem>>, %arg5: memref<1x128xf32, #tpu.memory_space<vmem>>, %arg6: memref<96x128xf32, #tpu.memory_space<vmem>>, %arg7: memref<64x128xf32, #tpu.memory_space<vmem>>, %arg8: memref<96x32xf32, #tpu.memory_space<vmem>>) attributes {dimension_semantics = [], scalar_prefetch = 0 : i64, scratch_operands = 2 : i64, tpu.core_type = #tpu.core_type<tc>} {
    %c0 = arith.constant 0 : index
    %c0_0 = arith.constant 0 : index
    %0 = vector.load %arg2[%c0, %c0_0] : memref<32x128xf32, #tpu.memory_space<vmem>>, vector<32x128xf32>
    %c0_1 = arith.constant 0 : index
    %c0_2 = arith.constant 0 : index
    %1 = vector.load %arg3[%c0_1, %c0_2] : memref<1x128xf32, #tpu.memory_space<vmem>>, vector<1x128xf32>
    %2 = vector.shape_cast %1 : vector<1x128xf32> to vector<1x128xf32>
    %3 = vector.broadcast %2 : vector<1x128xf32> to vector<8x128xf32>
    %c0_3 = arith.constant 0 : index
    %c0_4 = arith.constant 0 : index
    %4 = vector.load %arg0[%c0_3, %c0_4] : memref<64x4xf32, #tpu.memory_space<vmem>>, vector<64x4xf32>
    %c0_5 = arith.constant 0 : index
    %c0_6 = arith.constant 0 : index
    %5 = vector.load %arg1[%c0_5, %c0_6] : memref<4x128xf32, #tpu.memory_space<vmem>>, vector<4x128xf32>
    %cst = arith.constant dense<0.000000e+00> : vector<64x128xf32>
    %6 = tpu.matmul %4, %5, %cst {dimension_numbers = #tpu.dot_dimension_numbers<[1], [0], [0], [1], [0, 0, 1, 1], [], []>} : vector<64x4xf32>, vector<4x128xf32>, vector<64x128xf32> -> vector<64x128xf32>
    %c0_7 = arith.constant 0 : index
    %c0_8 = arith.constant 0 : index
    %7 = vector.load %arg3[%c0_7, %c0_8] : memref<1x128xf32, #tpu.memory_space<vmem>>, vector<1x128xf32>
    %8 = vector.broadcast %7 : vector<1x128xf32> to vector<64x128xf32>
    %9 = arith.addf %6, %8 : vector<64x128xf32>
    %c0_9 = arith.constant 0 : index
    %c0_10 = arith.constant 0 : index
    %10 = vector.load %arg7[%c0_9, %c0_10] : memref<64x128xf32, #tpu.memory_space<vmem>>, vector<64x128xf32>
    tpu.vector_store %arg7[%c0_9, %c0_10], %9 {strides = array<i32>} : memref<64x128xf32, #tpu.memory_space<vmem>>, vector<64x128xf32>,
    %cst_11 = arith.constant 0.000000e+00 : f32
    %11 = vector.broadcast %cst_11 : f32 to vector<8x32xf32>
    %cst_12 = arith.constant 0.000000e+00 : f32
    %12 = vector.broadcast %cst_12 : f32 to vector<8x32xf32>
    %cst_13 = arith.constant dense<0.000000e+00> : vector<8x128xf32>
    %13 = tpu.matmul %11, %0, %cst_13 {dimension_numbers = #tpu.dot_dimension_numbers<[1], [0], [0], [1], [0, 0, 1, 1], [], []>} : vector<8x32xf32>, vector<32x128xf32>, vector<8x128xf32> -> vector<8x128xf32>
    %c0_14 = arith.constant 0 : index
    %c0_15 = arith.constant 0 : index
    %14 = vector.load %arg7[%c0_14, %c0_15] : memref<64x128xf32, #tpu.memory_space<vmem>>, vector<8x128xf32>
    %15 = arith.addf %13, %14 : vector<8x128xf32>
    %16 = arith.negf %15 : vector<8x128xf32>
    %17 = math.exp %16 : vector<8x128xf32>
    %cst_16 = arith.constant 1.000000e+00 : f32
    %18 = vector.broadcast %cst_16 : f32 to vector<8x128xf32>
    %19 = arith.addf %18, %17 : vector<8x128xf32>
    %20 = arith.divf %18, %19 : vector<8x128xf32>
    %21 = math.tanh %15 : vector<8x128xf32>
    %22 = vector.extract_strided_slice %20 {offsets = [0, 0], sizes = [8, 32], strides = [1, 1]} : vector<8x128xf32> to vector<8x32xf32>
    %23 = vector.extract_strided_slice %20 {offsets = [0, 32], sizes = [8, 32], strides = [1, 1]} : vector<8x128xf32> to vector<8x32xf32>
    %24 = vector.extract_strided_slice %21 {offsets = [0, 64], sizes = [8, 32], strides = [1, 1]} : vector<8x128xf32> to vector<8x32xf32>
    %25 = vector.extract_strided_slice %20 {offsets = [0, 96], sizes = [8, 32], strides = [1, 1]} : vector<8x128xf32> to vector<8x32xf32>
    %26 = arith.mulf %23, %12 : vector<8x32xf32>
    %27 = arith.mulf %22, %24 : vector<8x32xf32>
    %28 = arith.addf %26, %27 : vector<8x32xf32>
    %29 = math.tanh %28 : vector<8x32xf32>
    %30 = arith.mulf %25, %29 : vector<8x32xf32>
    %c0_17 = arith.constant 0 : index
    %c0_18 = arith.constant 0 : index
    %31 = vector.load %arg8[%c0_17, %c0_18] : memref<96x32xf32, #tpu.memory_space<vmem>>, vector<8x32xf32>
    tpu.vector_store %arg8[%c0_17, %c0_18], %30 {strides = array<i32>} : memref<96x32xf32, #tpu.memory_space<vmem>>, vector<8x32xf32>,
    %cst_19 = arith.constant dense<0.000000e+00> : vector<8x128xf32>
    %32 = tpu.matmul %30, %0, %cst_19 {dimension_numbers = #tpu.dot_dimension_numbers<[1], [0], [0], [1], [0, 0, 1, 1], [], []>} : vector<8x32xf32>, vector<32x128xf32>, vector<8x128xf32> -> vector<8x128xf32>
    %c8 = arith.constant 8 : index
    %c0_20 = arith.constant 0 : index
    %33 = vector.load %arg7[%c8, %c0_20] : memref<64x128xf32, #tpu.memory_space<vmem>>, vector<8x128xf32>
    %34 = arith.addf %32, %33 : vector<8x128xf32>
    %35 = arith.negf %34 : vector<8x128xf32>
    %36 = math.exp %35 : vector<8x128xf32>
    %cst_21 = arith.constant 1.000000e+00 : f32
    %37 = vector.broadcast %cst_21 : f32 to vector<8x128xf32>
    %38 = arith.addf %37, %36 : vector<8x128xf32>
    %39 = arith.divf %37, %38 : vector<8x128xf32>
    %40 = math.tanh %34 : vector<8x128xf32>
    %41 = vector.extract_strided_slice %39 {offsets = [0, 0], sizes = [8, 32], strides = [1, 1]} : vector<8x128xf32> to vector<8x32xf32>
    %42 = vector.extract_strided_slice %39 {offsets = [0, 32], sizes = [8, 32], strides = [1, 1]} : vector<8x128xf32> to vector<8x32xf32>
    %43 = vector.extract_strided_slice %40 {offsets = [0, 64], sizes = [8, 32], strides = [1, 1]} : vector<8x128xf32> to vector<8x32xf32>
    %44 = vector.extract_strided_slice %39 {offsets = [0, 96], sizes = [8, 32], strides = [1, 1]} : vector<8x128xf32> to vector<8x32xf32>
    %45 = arith.mulf %42, %28 : vector<8x32xf32>
    %46 = arith.mulf %41, %43 : vector<8x32xf32>
    %47 = arith.addf %45, %46 : vector<8x32xf32>
    %48 = math.tanh %47 : vector<8x32xf32>
    %49 = arith.mulf %44, %48 : vector<8x32xf32>
    %c8_22 = arith.constant 8 : index
    %c0_23 = arith.constant 0 : index
    %50 = vector.load %arg8[%c8_22, %c0_23] : memref<96x32xf32, #tpu.memory_space<vmem>>, vector<8x32xf32>
    tpu.vector_store %arg8[%c8_22, %c0_23], %49 {strides = array<i32>} : memref<96x32xf32, #tpu.memory_space<vmem>>, vector<8x32xf32>,
    %cst_24 = arith.constant dense<0.000000e+00> : vector<8x128xf32>
    %51 = tpu.matmul %49, %0, %cst_24 {dimension_numbers = #tpu.dot_dimension_numbers<[1], [0], [0], [1], [0, 0, 1, 1], [], []>} : vector<8x32xf32>, vector<32x128xf32>, vector<8x128xf32> -> vector<8x128xf32>
    %c16 = arith.constant 16 : index
    %c0_25 = arith.constant 0 : index
    %52 = vector.load %arg7[%c16, %c0_25] : memref<64x128xf32, #tpu.memory_space<vmem>>, vector<8x128xf32>
    %53 = arith.addf %51, %52 : vector<8x128xf32>
    %54 = arith.negf %53 : vector<8x128xf32>
    %55 = math.exp %54 : vector<8x128xf32>
    %cst_26 = arith.constant 1.000000e+00 : f32
    %56 = vector.broadcast %cst_26 : f32 to vector<8x128xf32>
    %57 = arith.addf %56, %55 : vector<8x128xf32>
    %58 = arith.divf %56, %57 : vector<8x128xf32>
    %59 = math.tanh %53 : vector<8x128xf32>
    %60 = vector.extract_strided_slice %58 {offsets = [0, 0], sizes = [8, 32], strides = [1, 1]} : vector<8x128xf32> to vector<8x32xf32>
    %61 = vector.extract_strided_slice %58 {offsets = [0, 32], sizes = [8, 32], strides = [1, 1]} : vector<8x128xf32> to vector<8x32xf32>
    %62 = vector.extract_strided_slice %59 {offsets = [0, 64], sizes = [8, 32], strides = [1, 1]} : vector<8x128xf32> to vector<8x32xf32>
    %63 = vector.extract_strided_slice %58 {offsets = [0, 96], sizes = [8, 32], strides = [1, 1]} : vector<8x128xf32> to vector<8x32xf32>
    %64 = arith.mulf %61, %47 : vector<8x32xf32>
    %65 = arith.mulf %60, %62 : vector<8x32xf32>
    %66 = arith.addf %64, %65 : vector<8x32xf32>
    %67 = math.tanh %66 : vector<8x32xf32>
    %68 = arith.mulf %63, %67 : vector<8x32xf32>
    %c16_27 = arith.constant 16 : index
    %c0_28 = arith.constant 0 : index
    %69 = vector.load %arg8[%c16_27, %c0_28] : memref<96x32xf32, #tpu.memory_space<vmem>>, vector<8x32xf32>
    tpu.vector_store %arg8[%c16_27, %c0_28], %68 {strides = array<i32>} : memref<96x32xf32, #tpu.memory_space<vmem>>, vector<8x32xf32>,
    %cst_29 = arith.constant dense<0.000000e+00> : vector<8x128xf32>
    %70 = tpu.matmul %68, %0, %cst_29 {dimension_numbers = #tpu.dot_dimension_numbers<[1], [0], [0], [1], [0, 0, 1, 1], [], []>} : vector<8x32xf32>, vector<32x128xf32>, vector<8x128xf32> -> vector<8x128xf32>
    %c24 = arith.constant 24 : index
    %c0_30 = arith.constant 0 : index
    %71 = vector.load %arg7[%c24, %c0_30] : memref<64x128xf32, #tpu.memory_space<vmem>>, vector<8x128xf32>
    %72 = arith.addf %70, %71 : vector<8x128xf32>
    %73 = arith.negf %72 : vector<8x128xf32>
    %74 = math.exp %73 : vector<8x128xf32>
    %cst_31 = arith.constant 1.000000e+00 : f32
    %75 = vector.broadcast %cst_31 : f32 to vector<8x128xf32>
    %76 = arith.addf %75, %74 : vector<8x128xf32>
    %77 = arith.divf %75, %76 : vector<8x128xf32>
    %78 = math.tanh %72 : vector<8x128xf32>
    %79 = vector.extract_strided_slice %77 {offsets = [0, 0], sizes = [8, 32], strides = [1, 1]} : vector<8x128xf32> to vector<8x32xf32>
    %80 = vector.extract_strided_slice %77 {offsets = [0, 32], sizes = [8, 32], strides = [1, 1]} : vector<8x128xf32> to vector<8x32xf32>
    %81 = vector.extract_strided_slice %78 {offsets = [0, 64], sizes = [8, 32], strides = [1, 1]} : vector<8x128xf32> to vector<8x32xf32>
    %82 = vector.extract_strided_slice %77 {offsets = [0, 96], sizes = [8, 32], strides = [1, 1]} : vector<8x128xf32> to vector<8x32xf32>
    %83 = arith.mulf %80, %66 : vector<8x32xf32>
    %84 = arith.mulf %79, %81 : vector<8x32xf32>
    %85 = arith.addf %83, %84 : vector<8x32xf32>
    %86 = math.tanh %85 : vector<8x32xf32>
    %87 = arith.mulf %82, %86 : vector<8x32xf32>
    %c24_32 = arith.constant 24 : index
    %c0_33 = arith.constant 0 : index
    %88 = vector.load %arg8[%c24_32, %c0_33] : memref<96x32xf32, #tpu.memory_space<vmem>>, vector<8x32xf32>
    tpu.vector_store %arg8[%c24_32, %c0_33], %87 {strides = array<i32>} : memref<96x32xf32, #tpu.memory_space<vmem>>, vector<8x32xf32>,
    %cst_34 = arith.constant dense<0.000000e+00> : vector<8x128xf32>
    %89 = tpu.matmul %87, %0, %cst_34 {dimension_numbers = #tpu.dot_dimension_numbers<[1], [0], [0], [1], [0, 0, 1, 1], [], []>} : vector<8x32xf32>, vector<32x128xf32>, vector<8x128xf32> -> vector<8x128xf32>
    %c32 = arith.constant 32 : index
    %c0_35 = arith.constant 0 : index
    %90 = vector.load %arg7[%c32, %c0_35] : memref<64x128xf32, #tpu.memory_space<vmem>>, vector<8x128xf32>
    %91 = arith.addf %89, %90 : vector<8x128xf32>
    %92 = arith.negf %91 : vector<8x128xf32>
    %93 = math.exp %92 : vector<8x128xf32>
    %cst_36 = arith.constant 1.000000e+00 : f32
    %94 = vector.broadcast %cst_36 : f32 to vector<8x128xf32>
    %95 = arith.addf %94, %93 : vector<8x128xf32>
    %96 = arith.divf %94, %95 : vector<8x128xf32>
    %97 = math.tanh %91 : vector<8x128xf32>
    %98 = vector.extract_strided_slice %96 {offsets = [0, 0], sizes = [8, 32], strides = [1, 1]} : vector<8x128xf32> to vector<8x32xf32>
    %99 = vector.extract_strided_slice %96 {offsets = [0, 32], sizes = [8, 32], strides = [1, 1]} : vector<8x128xf32> to vector<8x32xf32>
    %100 = vector.extract_strided_slice %97 {offsets = [0, 64], sizes = [8, 32], strides = [1, 1]} : vector<8x128xf32> to vector<8x32xf32>
    %101 = vector.extract_strided_slice %96 {offsets = [0, 96], sizes = [8, 32], strides = [1, 1]} : vector<8x128xf32> to vector<8x32xf32>
    %102 = arith.mulf %99, %85 : vector<8x32xf32>
    %103 = arith.mulf %98, %100 : vector<8x32xf32>
    %104 = arith.addf %102, %103 : vector<8x32xf32>
    %105 = math.tanh %104 : vector<8x32xf32>
    %106 = arith.mulf %101, %105 : vector<8x32xf32>
    %c32_37 = arith.constant 32 : index
    %c0_38 = arith.constant 0 : index
    %107 = vector.load %arg8[%c32_37, %c0_38] : memref<96x32xf32, #tpu.memory_space<vmem>>, vector<8x32xf32>
    tpu.vector_store %arg8[%c32_37, %c0_38], %106 {strides = array<i32>} : memref<96x32xf32, #tpu.memory_space<vmem>>, vector<8x32xf32>,
    %cst_39 = arith.constant dense<0.000000e+00> : vector<8x128xf32>
    %108 = tpu.matmul %106, %0, %cst_39 {dimension_numbers = #tpu.dot_dimension_numbers<[1], [0], [0], [1], [0, 0, 1, 1], [], []>} : vector<8x32xf32>, vector<32x128xf32>, vector<8x128xf32> -> vector<8x128xf32>
    %c40 = arith.constant 40 : index
    %c0_40 = arith.constant 0 : index
    %109 = vector.load %arg7[%c40, %c0_40] : memref<64x128xf32, #tpu.memory_space<vmem>>, vector<8x128xf32>
    %110 = arith.addf %108, %109 : vector<8x128xf32>
    %111 = arith.negf %110 : vector<8x128xf32>
    %112 = math.exp %111 : vector<8x128xf32>
    %cst_41 = arith.constant 1.000000e+00 : f32
    %113 = vector.broadcast %cst_41 : f32 to vector<8x128xf32>
    %114 = arith.addf %113, %112 : vector<8x128xf32>
    %115 = arith.divf %113, %114 : vector<8x128xf32>
    %116 = math.tanh %110 : vector<8x128xf32>
    %117 = vector.extract_strided_slice %115 {offsets = [0, 0], sizes = [8, 32], strides = [1, 1]} : vector<8x128xf32> to vector<8x32xf32>
    %118 = vector.extract_strided_slice %115 {offsets = [0, 32], sizes = [8, 32], strides = [1, 1]} : vector<8x128xf32> to vector<8x32xf32>
    %119 = vector.extract_strided_slice %116 {offsets = [0, 64], sizes = [8, 32], strides = [1, 1]} : vector<8x128xf32> to vector<8x32xf32>
    %120 = vector.extract_strided_slice %115 {offsets = [0, 96], sizes = [8, 32], strides = [1, 1]} : vector<8x128xf32> to vector<8x32xf32>
    %121 = arith.mulf %118, %104 : vector<8x32xf32>
    %122 = arith.mulf %117, %119 : vector<8x32xf32>
    %123 = arith.addf %121, %122 : vector<8x32xf32>
    %124 = math.tanh %123 : vector<8x32xf32>
    %125 = arith.mulf %120, %124 : vector<8x32xf32>
    %c40_42 = arith.constant 40 : index
    %c0_43 = arith.constant 0 : index
    %126 = vector.load %arg8[%c40_42, %c0_43] : memref<96x32xf32, #tpu.memory_space<vmem>>, vector<8x32xf32>
    tpu.vector_store %arg8[%c40_42, %c0_43], %125 {strides = array<i32>} : memref<96x32xf32, #tpu.memory_space<vmem>>, vector<8x32xf32>,
    %cst_44 = arith.constant dense<0.000000e+00> : vector<8x128xf32>
    %127 = tpu.matmul %125, %0, %cst_44 {dimension_numbers = #tpu.dot_dimension_numbers<[1], [0], [0], [1], [0, 0, 1, 1], [], []>} : vector<8x32xf32>, vector<32x128xf32>, vector<8x128xf32> -> vector<8x128xf32>
    %c48 = arith.constant 48 : index
    %c0_45 = arith.constant 0 : index
    %128 = vector.load %arg7[%c48, %c0_45] : memref<64x128xf32, #tpu.memory_space<vmem>>, vector<8x128xf32>
    %129 = arith.addf %127, %128 : vector<8x128xf32>
    %130 = arith.negf %129 : vector<8x128xf32>
    %131 = math.exp %130 : vector<8x128xf32>
    %cst_46 = arith.constant 1.000000e+00 : f32
    %132 = vector.broadcast %cst_46 : f32 to vector<8x128xf32>
    %133 = arith.addf %132, %131 : vector<8x128xf32>
    %134 = arith.divf %132, %133 : vector<8x128xf32>
    %135 = math.tanh %129 : vector<8x128xf32>
    %136 = vector.extract_strided_slice %134 {offsets = [0, 0], sizes = [8, 32], strides = [1, 1]} : vector<8x128xf32> to vector<8x32xf32>
    %137 = vector.extract_strided_slice %134 {offsets = [0, 32], sizes = [8, 32], strides = [1, 1]} : vector<8x128xf32> to vector<8x32xf32>
    %138 = vector.extract_strided_slice %135 {offsets = [0, 64], sizes = [8, 32], strides = [1, 1]} : vector<8x128xf32> to vector<8x32xf32>
    %139 = vector.extract_strided_slice %134 {offsets = [0, 96], sizes = [8, 32], strides = [1, 1]} : vector<8x128xf32> to vector<8x32xf32>
    %140 = arith.mulf %137, %123 : vector<8x32xf32>
    %141 = arith.mulf %136, %138 : vector<8x32xf32>
    %142 = arith.addf %140, %141 : vector<8x32xf32>
    %143 = math.tanh %142 : vector<8x32xf32>
    %144 = arith.mulf %139, %143 : vector<8x32xf32>
    %c48_47 = arith.constant 48 : index
    %c0_48 = arith.constant 0 : index
    %145 = vector.load %arg8[%c48_47, %c0_48] : memref<96x32xf32, #tpu.memory_space<vmem>>, vector<8x32xf32>
    tpu.vector_store %arg8[%c48_47, %c0_48], %144 {strides = array<i32>} : memref<96x32xf32, #tpu.memory_space<vmem>>, vector<8x32xf32>,
    %cst_49 = arith.constant dense<0.000000e+00> : vector<8x128xf32>
    %146 = tpu.matmul %144, %0, %cst_49 {dimension_numbers = #tpu.dot_dimension_numbers<[1], [0], [0], [1], [0, 0, 1, 1], [], []>} : vector<8x32xf32>, vector<32x128xf32>, vector<8x128xf32> -> vector<8x128xf32>
    %c56 = arith.constant 56 : index
    %c0_50 = arith.constant 0 : index
    %147 = vector.load %arg7[%c56, %c0_50] : memref<64x128xf32, #tpu.memory_space<vmem>>, vector<8x128xf32>
    %148 = arith.addf %146, %147 : vector<8x128xf32>
    %149 = arith.negf %148 : vector<8x128xf32>
    %150 = math.exp %149 : vector<8x128xf32>
    %cst_51 = arith.constant 1.000000e+00 : f32
    %151 = vector.broadcast %cst_51 : f32 to vector<8x128xf32>
    %152 = arith.addf %151, %150 : vector<8x128xf32>
    %153 = arith.divf %151, %152 : vector<8x128xf32>
    %154 = math.tanh %148 : vector<8x128xf32>
    %155 = vector.extract_strided_slice %153 {offsets = [0, 0], sizes = [8, 32], strides = [1, 1]} : vector<8x128xf32> to vector<8x32xf32>
    %156 = vector.extract_strided_slice %153 {offsets = [0, 32], sizes = [8, 32], strides = [1, 1]} : vector<8x128xf32> to vector<8x32xf32>
    %157 = vector.extract_strided_slice %154 {offsets = [0, 64], sizes = [8, 32], strides = [1, 1]} : vector<8x128xf32> to vector<8x32xf32>
    %158 = vector.extract_strided_slice %153 {offsets = [0, 96], sizes = [8, 32], strides = [1, 1]} : vector<8x128xf32> to vector<8x32xf32>
    %159 = arith.mulf %156, %142 : vector<8x32xf32>
    %160 = arith.mulf %155, %157 : vector<8x32xf32>
    %161 = arith.addf %159, %160 : vector<8x32xf32>
    %162 = math.tanh %161 : vector<8x32xf32>
    %163 = arith.mulf %158, %162 : vector<8x32xf32>
    %c56_52 = arith.constant 56 : index
    %c0_53 = arith.constant 0 : index
    %164 = vector.load %arg8[%c56_52, %c0_53] : memref<96x32xf32, #tpu.memory_space<vmem>>, vector<8x32xf32>
    tpu.vector_store %arg8[%c56_52, %c0_53], %163 {strides = array<i32>} : memref<96x32xf32, #tpu.memory_space<vmem>>, vector<8x32xf32>,
    %cst_54 = arith.constant dense<0.000000e+00> : vector<8x128xf32>
    %165 = tpu.matmul %163, %0, %cst_54 {dimension_numbers = #tpu.dot_dimension_numbers<[1], [0], [0], [1], [0, 0, 1, 1], [], []>} : vector<8x32xf32>, vector<32x128xf32>, vector<8x128xf32> -> vector<8x128xf32>
    %166 = arith.addf %165, %3 : vector<8x128xf32>
    %167 = arith.negf %166 : vector<8x128xf32>
    %168 = math.exp %167 : vector<8x128xf32>
    %cst_55 = arith.constant 1.000000e+00 : f32
    %169 = vector.broadcast %cst_55 : f32 to vector<8x128xf32>
    %170 = arith.addf %169, %168 : vector<8x128xf32>
    %171 = arith.divf %169, %170 : vector<8x128xf32>
    %172 = math.tanh %166 : vector<8x128xf32>
    %173 = vector.extract_strided_slice %171 {offsets = [0, 0], sizes = [8, 32], strides = [1, 1]} : vector<8x128xf32> to vector<8x32xf32>
    %174 = vector.extract_strided_slice %171 {offsets = [0, 32], sizes = [8, 32], strides = [1, 1]} : vector<8x128xf32> to vector<8x32xf32>
    %175 = vector.extract_strided_slice %172 {offsets = [0, 64], sizes = [8, 32], strides = [1, 1]} : vector<8x128xf32> to vector<8x32xf32>
    %176 = vector.extract_strided_slice %171 {offsets = [0, 96], sizes = [8, 32], strides = [1, 1]} : vector<8x128xf32> to vector<8x32xf32>
    %177 = arith.mulf %174, %161 : vector<8x32xf32>
    %178 = arith.mulf %173, %175 : vector<8x32xf32>
    %179 = arith.addf %177, %178 : vector<8x32xf32>
    %180 = math.tanh %179 : vector<8x32xf32>
    %181 = arith.mulf %176, %180 : vector<8x32xf32>
    %c64 = arith.constant 64 : index
    %c0_56 = arith.constant 0 : index
    %182 = vector.load %arg8[%c64, %c0_56] : memref<96x32xf32, #tpu.memory_space<vmem>>, vector<8x32xf32>
    tpu.vector_store %arg8[%c64, %c0_56], %181 {strides = array<i32>} : memref<96x32xf32, #tpu.memory_space<vmem>>, vector<8x32xf32>,
    %cst_57 = arith.constant dense<0.000000e+00> : vector<8x128xf32>
    %183 = tpu.matmul %181, %0, %cst_57 {dimension_numbers = #tpu.dot_dimension_numbers<[1], [0], [0], [1], [0, 0, 1, 1], [], []>} : vector<8x32xf32>, vector<32x128xf32>, vector<8x128xf32> -> vector<8x128xf32>
    %184 = arith.addf %183, %3 : vector<8x128xf32>
    %185 = arith.negf %184 : vector<8x128xf32>
    %186 = math.exp %185 : vector<8x128xf32>
    %cst_58 = arith.constant 1.000000e+00 : f32
    %187 = vector.broadcast %cst_58 : f32 to vector<8x128xf32>
    %188 = arith.addf %187, %186 : vector<8x128xf32>
    %189 = arith.divf %187, %188 : vector<8x128xf32>
    %190 = math.tanh %184 : vector<8x128xf32>
    %191 = vector.extract_strided_slice %189 {offsets = [0, 0], sizes = [8, 32], strides = [1, 1]} : vector<8x128xf32> to vector<8x32xf32>
    %192 = vector.extract_strided_slice %189 {offsets = [0, 32], sizes = [8, 32], strides = [1, 1]} : vector<8x128xf32> to vector<8x32xf32>
    %193 = vector.extract_strided_slice %190 {offsets = [0, 64], sizes = [8, 32], strides = [1, 1]} : vector<8x128xf32> to vector<8x32xf32>
    %194 = vector.extract_strided_slice %189 {offsets = [0, 96], sizes = [8, 32], strides = [1, 1]} : vector<8x128xf32> to vector<8x32xf32>
    %195 = arith.mulf %192, %179 : vector<8x32xf32>
    %196 = arith.mulf %191, %193 : vector<8x32xf32>
    %197 = arith.addf %195, %196 : vector<8x32xf32>
    %198 = math.tanh %197 : vector<8x32xf32>
    %199 = arith.mulf %194, %198 : vector<8x32xf32>
    %c72 = arith.constant 72 : index
    %c0_59 = arith.constant 0 : index
    %200 = vector.load %arg8[%c72, %c0_59] : memref<96x32xf32, #tpu.memory_space<vmem>>, vector<8x32xf32>
    tpu.vector_store %arg8[%c72, %c0_59], %199 {strides = array<i32>} : memref<96x32xf32, #tpu.memory_space<vmem>>, vector<8x32xf32>,
    %cst_60 = arith.constant dense<0.000000e+00> : vector<8x128xf32>
    %201 = tpu.matmul %199, %0, %cst_60 {dimension_numbers = #tpu.dot_dimension_numbers<[1], [0], [0], [1], [0, 0, 1, 1], [], []>} : vector<8x32xf32>, vector<32x128xf32>, vector<8x128xf32> -> vector<8x128xf32>
    %202 = arith.addf %201, %3 : vector<8x128xf32>
    %203 = arith.negf %202 : vector<8x128xf32>
    %204 = math.exp %203 : vector<8x128xf32>
    %cst_61 = arith.constant 1.000000e+00 : f32
    %205 = vector.broadcast %cst_61 : f32 to vector<8x128xf32>
    %206 = arith.addf %205, %204 : vector<8x128xf32>
    %207 = arith.divf %205, %206 : vector<8x128xf32>
    %208 = math.tanh %202 : vector<8x128xf32>
    %209 = vector.extract_strided_slice %207 {offsets = [0, 0], sizes = [8, 32], strides = [1, 1]} : vector<8x128xf32> to vector<8x32xf32>
    %210 = vector.extract_strided_slice %207 {offsets = [0, 32], sizes = [8, 32], strides = [1, 1]} : vector<8x128xf32> to vector<8x32xf32>
    %211 = vector.extract_strided_slice %208 {offsets = [0, 64], sizes = [8, 32], strides = [1, 1]} : vector<8x128xf32> to vector<8x32xf32>
    %212 = vector.extract_strided_slice %207 {offsets = [0, 96], sizes = [8, 32], strides = [1, 1]} : vector<8x128xf32> to vector<8x32xf32>
    %213 = arith.mulf %210, %197 : vector<8x32xf32>
    %214 = arith.mulf %209, %211 : vector<8x32xf32>
    %215 = arith.addf %213, %214 : vector<8x32xf32>
    %216 = math.tanh %215 : vector<8x32xf32>
    %217 = arith.mulf %212, %216 : vector<8x32xf32>
    %c80 = arith.constant 80 : index
    %c0_62 = arith.constant 0 : index
    %218 = vector.load %arg8[%c80, %c0_62] : memref<96x32xf32, #tpu.memory_space<vmem>>, vector<8x32xf32>
    tpu.vector_store %arg8[%c80, %c0_62], %217 {strides = array<i32>} : memref<96x32xf32, #tpu.memory_space<vmem>>, vector<8x32xf32>,
    %cst_63 = arith.constant dense<0.000000e+00> : vector<8x128xf32>
    %219 = tpu.matmul %217, %0, %cst_63 {dimension_numbers = #tpu.dot_dimension_numbers<[1], [0], [0], [1], [0, 0, 1, 1], [], []>} : vector<8x32xf32>, vector<32x128xf32>, vector<8x128xf32> -> vector<8x128xf32>
    %220 = arith.addf %219, %3 : vector<8x128xf32>
    %221 = arith.negf %220 : vector<8x128xf32>
    %222 = math.exp %221 : vector<8x128xf32>
    %cst_64 = arith.constant 1.000000e+00 : f32
    %223 = vector.broadcast %cst_64 : f32 to vector<8x128xf32>
    %224 = arith.addf %223, %222 : vector<8x128xf32>
    %225 = arith.divf %223, %224 : vector<8x128xf32>
    %226 = math.tanh %220 : vector<8x128xf32>
    %227 = vector.extract_strided_slice %225 {offsets = [0, 0], sizes = [8, 32], strides = [1, 1]} : vector<8x128xf32> to vector<8x32xf32>
    %228 = vector.extract_strided_slice %225 {offsets = [0, 32], sizes = [8, 32], strides = [1, 1]} : vector<8x128xf32> to vector<8x32xf32>
    %229 = vector.extract_strided_slice %226 {offsets = [0, 64], sizes = [8, 32], strides = [1, 1]} : vector<8x128xf32> to vector<8x32xf32>
    %230 = vector.extract_strided_slice %225 {offsets = [0, 96], sizes = [8, 32], strides = [1, 1]} : vector<8x128xf32> to vector<8x32xf32>
    %231 = arith.mulf %228, %215 : vector<8x32xf32>
    %232 = arith.mulf %227, %229 : vector<8x32xf32>
    %233 = arith.addf %231, %232 : vector<8x32xf32>
    %234 = math.tanh %233 : vector<8x32xf32>
    %235 = arith.mulf %230, %234 : vector<8x32xf32>
    %c88 = arith.constant 88 : index
    %c0_65 = arith.constant 0 : index
    %236 = vector.load %arg8[%c88, %c0_65] : memref<96x32xf32, #tpu.memory_space<vmem>>, vector<8x32xf32>
    tpu.vector_store %arg8[%c88, %c0_65], %235 {strides = array<i32>} : memref<96x32xf32, #tpu.memory_space<vmem>>, vector<8x32xf32>,
    %c0_66 = arith.constant 0 : index
    %c0_67 = arith.constant 0 : index
    %237 = vector.load %arg8[%c0_66, %c0_67] : memref<96x32xf32, #tpu.memory_space<vmem>>, vector<96x32xf32>
    %c0_68 = arith.constant 0 : index
    %c0_69 = arith.constant 0 : index
    %238 = vector.load %arg4[%c0_68, %c0_69] : memref<32x128xf32, #tpu.memory_space<vmem>>, vector<32x128xf32>
    %cst_70 = arith.constant dense<0.000000e+00> : vector<96x128xf32>
    %239 = tpu.matmul %237, %238, %cst_70 {dimension_numbers = #tpu.dot_dimension_numbers<[1], [0], [0], [1], [0, 0, 1, 1], [], []>} : vector<96x32xf32>, vector<32x128xf32>, vector<96x128xf32> -> vector<96x128xf32>
    %c0_71 = arith.constant 0 : index
    %c0_72 = arith.constant 0 : index
    %240 = vector.load %arg5[%c0_71, %c0_72] : memref<1x128xf32, #tpu.memory_space<vmem>>, vector<1x128xf32>
    %241 = vector.broadcast %240 : vector<1x128xf32> to vector<96x128xf32>
    %242 = arith.addf %239, %241 : vector<96x128xf32>
    %c0_73 = arith.constant 0 : index
    %c0_74 = arith.constant 0 : index
    %243 = vector.load %arg6[%c0_73, %c0_74] : memref<96x128xf32, #tpu.memory_space<vmem>>, vector<96x128xf32>
    tpu.vector_store %arg6[%c0_73, %c0_74], %242 {strides = array<i32>} : memref<96x128xf32, #tpu.memory_space<vmem>>, vector<96x128xf32>,
    return
  }
}

</mosaic_0001>

<bundles_post_ra>
// kernel: tpu_custom_call.1
= control target key start
LH: loop header
LB: loop body
LE: loop exit
PB: predicated region body
PF: predicated region fallthrough
CT: control target
= control target key end

     0   :  { %vm66_vm0 = vcmask 1043456   ;;  %vm41_vm1 = vcmask 31744   ;;  %s1501_s0 = inlined_call_operand.vmem [shape: f32[64,4], index: 0, kind: input, shape index: {}]   ;;  %s1502_s1 = inlined_call_operand.vmem [shape: f32[4,128], index: 1, kind: input, shape index: {}]   ;;  %s1503_s2 = inlined_call_operand.vmem [shape: f32[32,128], index: 2, kind: input, shape index: {}]   ;;  %s1504_s3 = inlined_call_operand.vmem [shape: f32[1,128], index: 3, kind: input, shape index: {}]   ;;  %s1505_s4 = inlined_call_operand.vmem [shape: f32[32,128], index: 4, kind: input, shape index: {}]   ;;  %s1506_s5 = inlined_call_operand.vmem [shape: f32[1,128], index: 5, kind: input, shape index: {}]   ;;  %s1507_s6 = inlined_call_operand.hbm [shape: f32[96,128], index: 6, kind: output, shape index: {}]  }
   0x1   :  { %v1263_v0 = vld [vmem:[%s1503_s2 + $0x18] sm:$0xff]  ;;  %v1268_v1 = vld [vmem:[%s1503_s2 + $0x10] sm:$0xff]  ;;  %v40_v2 = vld [vmem:[%s1502_s1] sm:$0xf] }
   0x2   :  { %136 = vmatpush.msra.mxu1 %v1263_v0  ;;  %1036 = vmatpush.msk.msra.mxu0 %vm66_vm0, %v40_v2  ;;  %v32_v3 = vld [vmem:[%s1501_s0] sm:$0xff]  ;;  %v1280_v4 = vld [vmem:[%s1503_s2 + $0x8] sm:$0xff] }
   0x3   :  { %1037 = vmatmul.msk.f32.vlgmr.msra.gmra.mxu0 %vm41_vm1, %v32_v3  ;;  %201 = vmatpush.msra.mxu2 %v1263_v0 }
   0x4   :  { %137 = vmatpush.msra.mxu1 %v1268_v1  ;;  %266 = vmatpush.msra.mxu3 %v1263_v0 }
   0x5   :  { %11 = vsyncpa [#allocation5], 0  ;;  %v1289_v5 = vld [vmem:[%s1503_s2] sm:$0xff]  ;;  %202 = vmatpush.msra.mxu2 %v1268_v1  ;;  %v1219_v6 = vmov 0.0   ;;  %s1220_s9 = smov 64   ;;  %s1221_s10 = smov 32  }
   0x6   :  { %138 = vmatpush.msra.mxu1 %v1280_v4  ;;  %267 = vmatpush.msra.mxu3 %v1268_v1  ;;  %v1318_v7 = vld [vmem:[%s1504_s3] ss:$0 sm:$0xff]  ;;  %v33_v34 = vld [vmem:[%s1501_s0 + $0x8] sm:$0xff]  ;;  %vm120_vm6 = vcmask 261120   ;;  %v34_v62 = vld [vmem:[%s1501_s0 + $0x10] sm:$0xff]  ;;  %s1024_s13 = sshll.u32 %s1507_s6, 4  ;;  %s1025_s13 = int_to_ptr.hbm [resolvable:$true] %s1024_s13 }
   0x7   :  { %203 = vmatpush.msra.mxu2 %v1280_v4 }
   0x8   :  { %139 = vmatpush.msra.mxu1 %v1289_v5  ;;  %268 = vmatpush.msra.mxu3 %v1280_v4 }
   0x9   :  { %140 = vmatmul.f32.vlgmr.msra.gmra.mxu1 %v1219_v6  ;;  %204 = vmatpush.msra.mxu2 %v1289_v5 }
   0xa   :  { %269 = vmatpush.msra.mxu3 %v1289_v5  ;;  %331 = vmatpush.msrb.mxu1 %v1263_v0 }
   0xb   :  { %396 = vmatpush.msrb.mxu2 %v1263_v0  ;;  %1038 = vmatmul.msk.f32.gmra.mxu0 %vm41_vm1, %v33_v34 }
   0xc   :  { %461 = vmatpush.msrb.mxu3 %v1263_v0  ;;  %332 = vmatpush.msrb.mxu1 %v1268_v1 }
   0xd   :  { %397 = vmatpush.msrb.mxu2 %v1268_v1 }
   0xe   :  { %462 = vmatpush.msrb.mxu3 %v1268_v1  ;;  %333 = vmatpush.msrb.mxu1 %v1280_v4 }
   0xf   :  { %398 = vmatpush.msrb.mxu2 %v1280_v4 }
  0x10   :  { %463 = vmatpush.msrb.mxu3 %v1280_v4  ;;  %334 = vmatpush.msrb.mxu1 %v1289_v5 }
  0x11   :  { %399 = vmatpush.msrb.mxu2 %v1289_v5 }
  0x12   :  { %464 = vmatpush.msrb.mxu3 %v1289_v5  ;;  %526 = vmatpush.msra.mxu1 %v1263_v0 }
  0x13   :  { %1039 = vmatmul.msk.f32.gmra.mxu0 %vm41_vm1, %v34_v62 }
  0x14   :  { %527 = vmatpush.msra.mxu1 %v1268_v1 }
  0x16   :  { %528 = vmatpush.msra.mxu1 %v1280_v4 }
  0x18   :  { %529 = vmatpush.msra.mxu1 %v1289_v5 }
  0x80   :  { %v87_v8 = vpop.f32.mrf.mxu0 }
  0x81   :  { %v88_v9 = vadd.f32 %v1318_v7, %v87_v8 }
  0x86   :  { %v141_v10 = vpop.f32.mrf.mxu1 }
  0x87   :  { %v142_v11 = vadd.f32 %v141_v10, %v88_v9 }
  0x88   :  { %v90_v36 = vpop.f32.mrf.mxu0 }
  0x89   :  { %1096 = vtanh.f32 %v142_v11  ;;  %v1045_v13 = vmul.f32 -1.442695, %v142_v11  ;;  %v91_v37 = vadd.f32 %v1318_v7, %v90_v36 }
  0x8b   :  { %1098 = vpow2.f32 %v1045_v13 }
  0x8f   :  { %v1097_v12 = vpop.eup %1096 }
  0x90   :  { %166 = vrot.lane.b32.xlu0 %v1097_v12, %s1220_s9  ;;  %v93_v2 = vpop.f32.mrf.mxu0 }
  0x91   :  { %v1099_v14 = vpop.eup %1098  ;;  %v94_v3 = vadd.f32 %v1318_v7, %v93_v2 }
  0x92   :  { %v147_v15 = vadd.f32 1.0, %v1099_v14 }
  0x94   :  { %1100 = vrcp.f32 %v147_v15  ;;  %v159_v21 = vand.u32 2147483648, %v147_v15  ;;  %vm153_vm3 = vweird.f32 %v147_v15  ;;  %v157_v22 = vand.u32 2147483647, %v147_v15 }
  0x96   :  { %v160_v24 = vor.u32 1.1754944e-38, %v159_v21  ;;  %vm158_vm5 = vcmp.eq.f32.partialorder %v157_v22, 8.507059e+37 }
  0x9a   :  { %v1101_v16 = vpop.eup %1100 }
  0x9b   :  { %v149_v17 = vmul.f32 %v1101_v16, %v147_v15  ;;  %vm154_vm2 = vweird.f32 %v1101_v16 }
  0x9c   :  { %vm155_vm4 = vmor %vm153_vm3, %vm154_vm2 }
  0x9d   :  { %v150_v18 = vsub.f32 1.0, %v149_v17 }
  0x9f   :  { %v151_v19 = vmul.f32 %v1101_v16, %v150_v18 }
  0xa1   :  { %v152_v20 = vadd.f32 %v1101_v16, %v151_v19 }
  0xa3   :  { %v156_v23 = vsel %vm155_vm4, %v1101_v16, %v152_v20 }
  0xa4   :  { %v161_v26 = vsel %vm158_vm5, %v160_v24, %v156_v23 }
  0xa5   :  { %v164_v28 = vmul.f32 0.0, %v161_v26 }
 0x102   :  { %v167_v25 = vpop.permute.xlu0 %166 }
 0x103   :  { %v169_v27 = vmul.f32 %v167_v25, %v161_v26 }
 0x105   :  { %171 = vrot.lane.b32.xlu0 %v169_v27, %s1221_s10 }
 0x177   :  { %v172_v29 = vpop.permute.xlu0 %171 }
 0x178   :  { %v174_v30 = vadd.f32 %v172_v29, %v164_v28  ;;  %v35_v29 = vld [vmem:[%s1501_s0 + $0x18] sm:$0xff] }
 0x179   :  { %1040 = vmatmul.msk.f32.gmra.mxu0 %vm41_vm1, %v35_v29 }
 0x17a   :  { %1102 = vtanh.f32 %v174_v30 }
 0x180   :  { %v1103_v31 = vpop.eup %1102 }
 0x181   :  { %177 = vrot.lane.b32.xlu1 %v1103_v31, %s1220_s9 }
 0x1f3   :  { %v178_v32 = vpop.permute.xlu1 %177 }
 0x1f4   :  { %v180_v33 = vmul.f32 %v178_v32, %v161_v26 }
 0x1f6   :  { %182 = vrot.lane.b32.xlu1 %v180_v33, %s1221_s10  ;;  %v96_v33 = vpop.f32.mrf.mxu0 }
 0x1f7   :  { %v97_v34 = vadd.f32 %v1318_v7, %v96_v33 }
 0x268   :  { %v183_v35 = vpop.permute.xlu1 %182 }
 0x269   :  { %185 = vst.msk [vmem:[#allocation3] sm:$0xff] %vm120_vm6, %v183_v35  ;;  %1046 = vmatmul.msk.f32.vlgmr.msra.gmra.mxu2 %vm120_vm6, %v183_v35 }
 0x26a   :  { %591 = vmatpush.msra.mxu2 %v1263_v0 }
 0x26c   :  { %592 = vmatpush.msra.mxu2 %v1268_v1 }
 0x26e   :  { %593 = vmatpush.msra.mxu2 %v1280_v4 }
 0x270   :  { %594 = vmatpush.msra.mxu2 %v1289_v5 }
 0x2ec   :  { %v206_v38 = vpop.f32.mrf.mxu2 }
 0x2ed   :  { %v207_v39 = vadd.f32 %v206_v38, %v91_v37 }
 0x2ef   :  { %1104 = vtanh.f32 %v207_v39  ;;  %v1047_v41 = vmul.f32 -1.442695, %v207_v39 }
 0x2f1   :  { %1106 = vpow2.f32 %v1047_v41 }
 0x2f5   :  { %v1105_v40 = vpop.eup %1104 }
 0x2f6   :  { %231 = vrot.lane.b32.xlu2 %v1105_v40, %s1220_s9 }
 0x2f7   :  { %v1107_v42 = vpop.eup %1106 }
 0x2f8   :  { %v212_v43 = vadd.f32 1.0, %v1107_v42 }
 0x2fa   :  { %1108 = vrcp.f32 %v212_v43  ;;  %v224_v49 = vand.u32 2147483648, %v212_v43  ;;  %vm218_vm8 = vweird.f32 %v212_v43  ;;  %v222_v50 = vand.u32 2147483647, %v212_v43 }
 0x2fc   :  { %v225_v52 = vor.u32 1.1754944e-38, %v224_v49  ;;  %vm223_vm10 = vcmp.eq.f32.partialorder %v222_v50, 8.507059e+37 }
 0x300   :  { %v1109_v44 = vpop.eup %1108 }
 0x301   :  { %v214_v45 = vmul.f32 %v1109_v44, %v212_v43  ;;  %vm219_vm7 = vweird.f32 %v1109_v44 }
 0x302   :  { %vm220_vm9 = vmor %vm218_vm8, %vm219_vm7 }
 0x303   :  { %v215_v46 = vsub.f32 1.0, %v214_v45 }
 0x305   :  { %v216_v47 = vmul.f32 %v1109_v44, %v215_v46 }
 0x307   :  { %v217_v48 = vadd.f32 %v1109_v44, %v216_v47 }
 0x309   :  { %v221_v51 = vsel %vm220_vm9, %v1109_v44, %v217_v48 }
 0x30a   :  { %v226_v54 = vsel %vm223_vm10, %v225_v52, %v221_v51 }
 0x30b   :  { %v229_v56 = vmul.f32 %v226_v54, %v174_v30 }
 0x350   :  { %v232_v53 = vpop.permute.xlu2 %231 }
 0x351   :  { %v234_v55 = vmul.f32 %v232_v53, %v226_v54 }
 0x353   :  { %236 = vrot.lane.b32.xlu2 %v234_v55, %s1221_s10 }
 0x3ad   :  { %v237_v57 = vpop.permute.xlu2 %236 }
 0x3ae   :  { %v239_v58 = vadd.f32 %v237_v57, %v229_v56 }
 0x3b0   :  { %1110 = vtanh.f32 %v239_v58 }
 0x3b6   :  { %v1111_v59 = vpop.eup %1110 }
 0x3b7   :  { %242 = vrot.lane.b32.xlu0 %v1111_v59, %s1220_s9  ;;  %v36_v59 = vld [vmem:[%s1501_s0 + $0x20] sm:$0xff] }
 0x3b8   :  { %1041 = vmatmul.msk.f32.gmra.mxu0 %vm41_vm1, %v36_v59 }
 0x429   :  { %v243_v60 = vpop.permute.xlu0 %242 }
 0x42a   :  { %v245_v61 = vmul.f32 %v243_v60, %v226_v54 }
 0x42c   :  { %247 = vrot.lane.b32.xlu1 %v245_v61, %s1221_s10 }
 0x435   :  { %v99_v61 = vpop.f32.mrf.mxu0 }
 0x436   :  { %v100_v62 = vadd.f32 %v1318_v7, %v99_v61 }
 0x49e   :  { %v248_v63 = vpop.permute.xlu1 %247 }
 0x49f   :  { %250 = vst.msk [vmem:[#allocation3 + $0x8] sm:$0xff] %vm120_vm6, %v248_v63  ;;  %1048 = vmatmul.msk.f32.vlgmr.msra.gmra.mxu3 %vm120_vm6, %v248_v63 }
 0x4a0   :  { %655 = vmatpush.msra.mxu3 %v1263_v0 }
 0x4a2   :  { %656 = vmatpush.msra.mxu3 %v1268_v1 }
 0x4a4   :  { %657 = vmatpush.msra.mxu3 %v1280_v4 }
 0x4a6   :  { %658 = vmatpush.msra.mxu3 %v1289_v5 }
 0x522   :  { %v271_v6 = vpop.f32.mrf.mxu3 }
 0x523   :  { %v272_v8 = vadd.f32 %v271_v6, %v94_v3 }
 0x525   :  { %1112 = vtanh.f32 %v272_v8  ;;  %v1049_v10 = vmul.f32 -1.442695, %v272_v8 }
 0x527   :  { %1114 = vpow2.f32 %v1049_v10 }
 0x52b   :  { %v1113_v9 = vpop.eup %1112 }
 0x52c   :  { %296 = vrot.lane.b32.xlu2 %v1113_v9, %s1220_s9 }
 0x52d   :  { %v1115_v11 = vpop.eup %1114 }
 0x52e   :  { %v277_v12 = vadd.f32 1.0, %v1115_v11 }
 0x530   :  { %1116 = vrcp.f32 %v277_v12  ;;  %v289_v18 = vand.u32 2147483648, %v277_v12  ;;  %vm283_vm12 = vweird.f32 %v277_v12  ;;  %v287_v19 = vand.u32 2147483647, %v277_v12 }
 0x532   :  { %v290_v21 = vor.u32 1.1754944e-38, %v289_v18  ;;  %vm288_vm14 = vcmp.eq.f32.partialorder %v287_v19, 8.507059e+37 }
 0x536   :  { %v1117_v13 = vpop.eup %1116 }
 0x537   :  { %v279_v14 = vmul.f32 %v1117_v13, %v277_v12  ;;  %vm284_vm11 = vweird.f32 %v1117_v13 }
 0x538   :  { %vm285_vm13 = vmor %vm283_vm12, %vm284_vm11 }
 0x539   :  { %v280_v15 = vsub.f32 1.0, %v279_v14 }
 0x53b   :  { %v281_v16 = vmul.f32 %v1117_v13, %v280_v15 }
 0x53d   :  { %v282_v17 = vadd.f32 %v1117_v13, %v281_v16 }
 0x53f   :  { %v286_v20 = vsel %vm285_vm13, %v1117_v13, %v282_v17 }
 0x540   :  { %v291_v23 = vsel %vm288_vm14, %v290_v21, %v286_v20 }
 0x541   :  { %v294_v25 = vmul.f32 %v291_v23, %v239_v58 }
 0x586   :  { %v297_v22 = vpop.permute.xlu2 %296 }
 0x587   :  { %v299_v24 = vmul.f32 %v297_v22, %v291_v23 }
 0x589   :  { %301 = vrot.lane.b32.xlu0 %v299_v24, %s1221_s10 }
 0x5fb   :  { %v302_v26 = vpop.permute.xlu0 %301 }
 0x5fc   :  { %v304_v27 = vadd.f32 %v302_v26, %v294_v25 }
 0x5fe   :  { %1118 = vtanh.f32 %v304_v27 }
 0x604   :  { %v1119_v28 = vpop.eup %1118 }
 0x605   :  { %307 = vrot.lane.b32.xlu1 %v1119_v28, %s1220_s9  ;;  %v37_v28 = vld [vmem:[%s1501_s0 + $0x28] sm:$0xff] }
 0x606   :  { %1042 = vmatmul.msk.f32.gmra.mxu0 %vm41_vm1, %v37_v28 }
 0x677   :  { %v308_v30 = vpop.permute.xlu1 %307 }
 0x678   :  { %v310_v31 = vmul.f32 %v308_v30, %v291_v23 }
 0x67a   :  { %312 = vrot.lane.b32.xlu2 %v310_v31, %s1221_s10 }
 0x683   :  { %v102_v30 = vpop.f32.mrf.mxu0 }
 0x684   :  { %v103_v31 = vadd.f32 %v1318_v7, %v102_v30 }
 0x6d4   :  { %v313_v32 = vpop.permute.xlu2 %312 }
 0x6d5   :  { %315 = vst.msk [vmem:[#allocation3 + $0x10] sm:$0xff] %vm120_vm6, %v313_v32  ;;  %1050 = vmatmul.msk.f32.vlgmr.msrb.gmra.mxu1 %vm120_vm6, %v313_v32 }
 0x6d6   :  { %719 = vmatpush.msrb.mxu1 %v1263_v0 }
 0x6d8   :  { %720 = vmatpush.msrb.mxu1 %v1268_v1 }
 0x6da   :  { %721 = vmatpush.msrb.mxu1 %v1280_v4 }
 0x6dc   :  { %722 = vmatpush.msrb.mxu1 %v1289_v5 }
 0x752   :  { %v336_v35 = vpop.f32.mrf.mxu1 }
 0x753   :  { %v337_v36 = vadd.f32 %v336_v35, %v97_v34 }
 0x755   :  { %1120 = vtanh.f32 %v337_v36  ;;  %v1051_v38 = vmul.f32 -1.442695, %v337_v36 }
 0x757   :  { %1122 = vpow2.f32 %v1051_v38 }
 0x75b   :  { %v1121_v37 = vpop.eup %1120 }
 0x75c   :  { %361 = vrot.lane.b32.xlu0 %v1121_v37, %s1220_s9 }
 0x75d   :  { %v1123_v39 = vpop.eup %1122 }
 0x75e   :  { %v342_v40 = vadd.f32 1.0, %v1123_v39 }
 0x760   :  { %1124 = vrcp.f32 %v342_v40  ;;  %v354_v46 = vand.u32 2147483648, %v342_v40  ;;  %vm348_vm0 = vweird.f32 %v342_v40  ;;  %v352_v47 = vand.u32 2147483647, %v342_v40 }
 0x762   :  { %v355_v49 = vor.u32 1.1754944e-38, %v354_v46  ;;  %vm353_vm3 = vcmp.eq.f32.partialorder %v352_v47, 8.507059e+37 }
 0x766   :  { %v1125_v41 = vpop.eup %1124 }
 0x767   :  { %v344_v42 = vmul.f32 %v1125_v41, %v342_v40  ;;  %vm349_vm15 = vweird.f32 %v1125_v41 }
 0x768   :  { %vm350_vm2 = vmor %vm348_vm0, %vm349_vm15 }
 0x769   :  { %v345_v43 = vsub.f32 1.0, %v344_v42 }
 0x76b   :  { %v346_v44 = vmul.f32 %v1125_v41, %v345_v43 }
 0x76d   :  { %v347_v45 = vadd.f32 %v1125_v41, %v346_v44 }
 0x76f   :  { %v351_v48 = vsel %vm350_vm2, %v1125_v41, %v347_v45 }
 0x770   :  { %v356_v51 = vsel %vm353_vm3, %v355_v49, %v351_v48 }
 0x771   :  { %v359_v53 = vmul.f32 %v356_v51, %v304_v27 }
 0x7ce   :  { %v362_v50 = vpop.permute.xlu0 %361 }
 0x7cf   :  { %v364_v52 = vmul.f32 %v362_v50, %v356_v51  ;;  %v38_v50 = vld [vmem:[%s1501_s0 + $0x30] sm:$0xff] }
 0x7d0   :  { %1043 = vmatmul.msk.f32.gmra.mxu0 %vm41_vm1, %v38_v50 }
 0x7d1   :  { %366 = vrot.lane.b32.xlu1 %v364_v52, %s1221_s10 }
 0x843   :  { %v367_v54 = vpop.permute.xlu1 %366 }
 0x844   :  { %v369_v55 = vadd.f32 %v367_v54, %v359_v53 }
 0x846   :  { %1126 = vtanh.f32 %v369_v55 }
 0x84c   :  { %v1127_v56 = vpop.eup %1126 }
 0x84d   :  { %372 = vrot.lane.b32.xlu2 %v1127_v56, %s1220_s9  ;;  %v105_v54 = vpop.f32.mrf.mxu0 }
 0x8a7   :  { %v373_v57 = vpop.permute.xlu2 %372 }
 0x8a8   :  { %v375_v58 = vmul.f32 %v373_v57, %v356_v51 }
 0x8aa   :  { %377 = vrot.lane.b32.xlu0 %v375_v58, %s1221_s10 }
 0x91c   :  { %v378_v60 = vpop.permute.xlu0 %377 }
 0x91d   :  { %380 = vst.msk [vmem:[#allocation3 + $0x18] sm:$0xff] %vm120_vm6, %v378_v60  ;;  %1052 = vmatmul.msk.f32.vlgmr.msrb.gmra.mxu2 %vm120_vm6, %v378_v60 }
 0x91e   :  { %783 = vmatpush.msrb.mxu2 %v1263_v0 }
 0x920   :  { %784 = vmatpush.msrb.mxu2 %v1268_v1 }
 0x922   :  { %785 = vmatpush.msrb.mxu2 %v1280_v4 }
 0x924   :  { %786 = vmatpush.msrb.mxu2 %v1289_v5 }
 0x9a0   :  { %v401_v63 = vpop.f32.mrf.mxu2 }
 0x9a1   :  { %v402_v2 = vadd.f32 %v401_v63, %v100_v62 }
 0x9a3   :  { %1128 = vtanh.f32 %v402_v2  ;;  %v1053_v6 = vmul.f32 -1.442695, %v402_v2 }
 0x9a5   :  { %1130 = vpow2.f32 %v1053_v6 }
 0x9a9   :  { %v1129_v3 = vpop.eup %1128 }
 0x9aa   :  { %426 = vrot.lane.b32.xlu1 %v1129_v3, %s1220_s9 }
 0x9ab   :  { %v1131_v8 = vpop.eup %1130 }
 0x9ac   :  { %v407_v9 = vadd.f32 1.0, %v1131_v8 }
 0x9ae   :  { %1132 = vrcp.f32 %v407_v9  ;;  %v419_v15 = vand.u32 2147483648, %v407_v9  ;;  %vm413_vm5 = vweird.f32 %v407_v9  ;;  %v417_v16 = vand.u32 2147483647, %v407_v9 }
 0x9b0   :  { %v420_v18 = vor.u32 1.1754944e-38, %v419_v15  ;;  %vm418_vm8 = vcmp.eq.f32.partialorder %v417_v16, 8.507059e+37 }
 0x9b4   :  { %v1133_v10 = vpop.eup %1132 }
 0x9b5   :  { %v409_v11 = vmul.f32 %v1133_v10, %v407_v9  ;;  %vm414_vm4 = vweird.f32 %v1133_v10 }
 0x9b6   :  { %vm415_vm7 = vmor %vm413_vm5, %vm414_vm4 }
 0x9b7   :  { %v410_v12 = vsub.f32 1.0, %v409_v11 }
 0x9b9   :  { %v411_v13 = vmul.f32 %v1133_v10, %v410_v12 }
 0x9bb   :  { %v412_v14 = vadd.f32 %v1133_v10, %v411_v13 }
 0x9bd   :  { %v416_v17 = vsel %vm415_vm7, %v1133_v10, %v412_v14 }
 0x9be   :  { %v421_v20 = vsel %vm418_vm8, %v420_v18, %v416_v17 }
 0x9bf   :  { %v424_v22 = vmul.f32 %v421_v20, %v369_v55  ;;  %v106_v55 = vadd.f32 %v1318_v7, %v105_v54 }
 0xa1c   :  { %v427_v19 = vpop.permute.xlu1 %426 }
 0xa1d   :  { %v429_v21 = vmul.f32 %v427_v19, %v421_v20 }
 0xa1f   :  { %431 = vrot.lane.b32.xlu2 %v429_v21, %s1221_s10  ;;  %v39_v21 = vld [vmem:[%s1501_s0 + $0x38] sm:$0xff] }
 0xa20   :  { %1044 = vmatmul.msk.f32.gmra.mxu0 %vm41_vm1, %v39_v21 }
 0xa79   :  { %v432_v23 = vpop.permute.xlu2 %431 }
 0xa7a   :  { %v434_v24 = vadd.f32 %v432_v23, %v424_v22 }
 0xa7c   :  { %1134 = vtanh.f32 %v434_v24 }
 0xa82   :  { %v1135_v25 = vpop.eup %1134 }
 0xa83   :  { %437 = vrot.lane.b32.xlu0 %v1135_v25, %s1220_s9 }
 0xa9d   :  { %v108_v23 = vpop.f32.mrf.mxu0 }
 0xaf5   :  { %v438_v26 = vpop.permute.xlu0 %437 }
 0xaf6   :  { %v440_v27 = vmul.f32 %v438_v26, %v421_v20 }
 0xaf8   :  { %442 = vrot.lane.b32.xlu1 %v440_v27, %s1221_s10 }
 0xb6a   :  { %v443_v29 = vpop.permute.xlu1 %442 }
 0xb6b   :  { %445 = vst.msk [vmem:[#allocation3 + $0x20] sm:$0xff] %vm120_vm6, %v443_v29  ;;  %1054 = vmatmul.msk.f32.vlgmr.msrb.gmra.mxu3 %vm120_vm6, %v443_v29 }
 0xb6c   :  { %847 = vmatpush.msrb.mxu3 %v1263_v0 }
 0xb6e   :  { %848 = vmatpush.msrb.mxu3 %v1268_v1 }
 0xb70   :  { %849 = vmatpush.msrb.mxu3 %v1280_v4 }
 0xb72   :  { %850 = vmatpush.msrb.mxu3 %v1289_v5 }
 0xbee   :  { %v466_v32 = vpop.f32.mrf.mxu3 }
 0xbef   :  { %v467_v33 = vadd.f32 %v466_v32, %v103_v31 }
 0xbf1   :  { %1136 = vtanh.f32 %v467_v33  ;;  %v1055_v35 = vmul.f32 -1.442695, %v467_v33 }
 0xbf3   :  { %1138 = vpow2.f32 %v1055_v35 }
 0xbf7   :  { %v1137_v34 = vpop.eup %1136 }
 0xbf8   :  { %491 = vrot.lane.b32.xlu2 %v1137_v34, %s1220_s9 }
 0xbf9   :  { %v1139_v36 = vpop.eup %1138 }
 0xbfa   :  { %v472_v37 = vadd.f32 1.0, %v1139_v36 }
 0xbfc   :  { %1140 = vrcp.f32 %v472_v37  ;;  %v484_v5 = vand.u32 2147483648, %v472_v37  ;;  %vm478_vm10 = vweird.f32 %v472_v37  ;;  %v482_v40 = vand.u32 2147483647, %v472_v37 }
 0xbfe   :  { %v485_v42 = vor.u32 1.1754944e-38, %v484_v5  ;;  %vm483_vm12 = vcmp.eq.f32.partialorder %v482_v40, 8.507059e+37 }
 0xc02   :  { %v1141_v0 = vpop.eup %1140 }
 0xc03   :  { %v474_v1 = vmul.f32 %v1141_v0, %v472_v37  ;;  %vm479_vm9 = vweird.f32 %v1141_v0 }
 0xc04   :  { %vm480_vm11 = vmor %vm478_vm10, %vm479_vm9 }
 0xc05   :  { %v475_v38 = vsub.f32 1.0, %v474_v1 }
 0xc07   :  { %v476_v4 = vmul.f32 %v1141_v0, %v475_v38 }
 0xc09   :  { %v477_v39 = vadd.f32 %v1141_v0, %v476_v4 }
 0xc0b   :  { %v481_v41 = vsel %vm480_vm11, %v1141_v0, %v477_v39 }
 0xc0c   :  { %v486_v44 = vsel %vm483_vm12, %v485_v42, %v481_v41 }
 0xc0d   :  { %v489_v46 = vmul.f32 %v486_v44, %v434_v24  ;;  %v109_v24 = vadd.f32 %v1318_v7, %v108_v23 }
 0xc52   :  { %v492_v43 = vpop.permute.xlu2 %491 }
 0xc53   :  { %v494_v45 = vmul.f32 %v492_v43, %v486_v44 }
 0xc55   :  { %496 = vrot.lane.b32.xlu0 %v494_v45, %s1221_s10 }
 0xcc7   :  { %v497_v47 = vpop.permute.xlu0 %496 }
 0xcc8   :  { %v499_v48 = vadd.f32 %v497_v47, %v489_v46 }
 0xcca   :  { %1142 = vtanh.f32 %v499_v48 }
 0xcd0   :  { %v1143_v49 = vpop.eup %1142 }
 0xcd1   :  { %502 = vrot.lane.b32.xlu1 %v1143_v49, %s1220_s9 }
 0xd43   :  { %v503_v51 = vpop.permute.xlu1 %502 }
 0xd44   :  { %v505_v52 = vmul.f32 %v503_v51, %v486_v44 }
 0xd46   :  { %507 = vrot.lane.b32.xlu2 %v505_v52, %s1221_s10 }
 0xda0   :  { %v508_v53 = vpop.permute.xlu2 %507 }
 0xda1   :  { %510 = vst.msk [vmem:[#allocation3 + $0x28] sm:$0xff] %vm120_vm6, %v508_v53  ;;  %1056 = vmatmul.msk.f32.vlgmr.msra.gmra.mxu1 %vm120_vm6, %v508_v53 }
 0xe1e   :  { %v531_v56 = vpop.f32.mrf.mxu1 }
 0xe1f   :  { %v532_v57 = vadd.f32 %v531_v56, %v106_v55 }
 0xe21   :  { %1144 = vtanh.f32 %v532_v57  ;;  %v1057_v59 = vmul.f32 -1.442695, %v532_v57 }
 0xe23   :  { %1146 = vpow2.f32 %v1057_v59 }
 0xe27   :  { %v1145_v58 = vpop.eup %1144 }
 0xe28   :  { %556 = vrot.lane.b32.xlu0 %v1145_v58, %s1220_s9 }
 0xe29   :  { %v1147_v60 = vpop.eup %1146 }
 0xe2a   :  { %v537_v61 = vadd.f32 1.0, %v1147_v60 }
 0xe2c   :  { %1148 = vrcp.f32 %v537_v61  ;;  %v549_v8 = vand.u32 2147483648, %v537_v61  ;;  %vm543_vm14 = vweird.f32 %v537_v61  ;;  %v547_v9 = vand.u32 2147483647, %v537_v61 }
 0xe2e   :  { %v550_v11 = vor.u32 1.1754944e-38, %v549_v8  ;;  %vm548_vm0 = vcmp.eq.f32.partialorder %v547_v9, 8.507059e+37 }
 0xe32   :  { %v1149_v62 = vpop.eup %1148 }
 0xe33   :  { %v539_v63 = vmul.f32 %v1149_v62, %v537_v61  ;;  %vm544_vm13 = vweird.f32 %v1149_v62 }
 0xe34   :  { %vm545_vm15 = vmor %vm543_vm14, %vm544_vm13 }
 0xe35   :  { %v540_v2 = vsub.f32 1.0, %v539_v63 }
 0xe37   :  { %v541_v3 = vmul.f32 %v1149_v62, %v540_v2 }
 0xe39   :  { %v542_v6 = vadd.f32 %v1149_v62, %v541_v3 }
 0xe3b   :  { %v546_v10 = vsel %vm545_vm15, %v1149_v62, %v542_v6 }
 0xe3c   :  { %v551_v13 = vsel %vm548_vm0, %v550_v11, %v546_v10  ;;  %v912_v11 = vld [vmem:[%s1505_s4 + $0x18] sm:$0xff] }
 0xe3d   :  { %v554_v15 = vmul.f32 %v551_v13, %v499_v48  ;;  %965 = vmatpush.msra.mxu1 %v912_v11 }
 0xe9a   :  { %v557_v12 = vpop.permute.xlu0 %556 }
 0xe9b   :  { %v559_v14 = vmul.f32 %v557_v12, %v551_v13  ;;  %v911_v12 = vld [vmem:[%s1505_s4 + $0x10] sm:$0xff] }
 0xe9c   :  { %966 = vmatpush.msra.mxu1 %v911_v12 }
 0xe9d   :  { %561 = vrot.lane.b32.xlu1 %v559_v14, %s1221_s10  ;;  %v909_v14 = vld [vmem:[%s1505_s4] sm:$0xff] }
 0xf0f   :  { %v562_v16 = vpop.permute.xlu1 %561 }
 0xf10   :  { %v564_v17 = vadd.f32 %v562_v16, %v554_v15  ;;  %v897_v16 = vld [vmem:[#allocation3] sm:$0xff] }
 0xf12   :  { %1150 = vtanh.f32 %v564_v17 }
 0xf18   :  { %v1151_v18 = vpop.eup %1150 }
 0xf19   :  { %567 = vrot.lane.b32.xlu2 %v1151_v18, %s1220_s9  ;;  %v899_v18 = vld [vmem:[#allocation3 + $0x10] sm:$0xff] }
 0xf73   :  { %v568_v19 = vpop.permute.xlu2 %567 }
 0xf74   :  { %v570_v20 = vmul.f32 %v568_v19, %v551_v13  ;;  %v910_v13 = vld [vmem:[%s1505_s4 + $0x8] sm:$0xff]  ;;  %v900_v19 = vld [vmem:[#allocation3 + $0x18] sm:$0xff] }
 0xf75   :  { %967 = vmatpush.msra.mxu1 %v910_v13 }
 0xf76   :  { %572 = vrot.lane.b32.xlu0 %v570_v20, %s1221_s10 }
 0xf77   :  { %968 = vmatpush.msra.mxu1 %v909_v14 }
 0xfe8   :  { %v573_v22 = vpop.permute.xlu0 %572 }
 0xfe9   :  { %575 = vst.msk [vmem:[#allocation3 + $0x30] sm:$0xff] %vm120_vm6, %v573_v22  ;;  %1058 = vmatmul.msk.f32.vlgmr.msra.gmra.mxu2 %vm120_vm6, %v573_v22  ;;  %v1454_v22 = vld [vmem:[%s1506_s5] ss:$0 sm:$0xff] }
 0xfea   :  { %1080 = vmatpush.msra.mxu2 %v912_v11 }
 0xfec   :  { %1082 = vmatpush.msra.mxu2 %v911_v12 }
 0xfee   :  { %1084 = vmatpush.msra.mxu2 %v910_v13 }
 0xff0   :  { %1086 = vmatpush.msra.mxu2 %v909_v14 }
0x106c   :  { %v596_v25 = vpop.f32.mrf.mxu2 }
0x106d   :  { %v597_v26 = vadd.f32 %v596_v25, %v109_v24 }
0x106f   :  { %1152 = vtanh.f32 %v597_v26  ;;  %v1059_v28 = vmul.f32 -1.442695, %v597_v26 }
0x1071   :  { %1154 = vpow2.f32 %v1059_v28 }
0x1075   :  { %v1153_v27 = vpop.eup %1152 }
0x1076   :  { %621 = vrot.lane.b32.xlu1 %v1153_v27, %s1220_s9 }
0x1077   :  { %v1155_v29 = vpop.eup %1154 }
0x1078   :  { %v602_v30 = vadd.f32 1.0, %v1155_v29 }
0x107a   :  { %1156 = vrcp.f32 %v602_v30  ;;  %v614_v36 = vand.u32 2147483648, %v602_v30  ;;  %vm608_vm2 = vweird.f32 %v602_v30  ;;  %v612_v37 = vand.u32 2147483647, %v602_v30 }
0x107c   :  { %v615_v1 = vor.u32 1.1754944e-38, %v614_v36  ;;  %vm613_vm4 = vcmp.eq.f32.partialorder %v612_v37, 8.507059e+37 }
0x1080   :  { %v1157_v31 = vpop.eup %1156 }
0x1081   :  { %v604_v32 = vmul.f32 %v1157_v31, %v602_v30  ;;  %vm609_vm1 = vweird.f32 %v1157_v31 }
0x1082   :  { %vm610_vm3 = vmor %vm608_vm2, %vm609_vm1 }
0x1083   :  { %v605_v33 = vsub.f32 1.0, %v604_v32 }
0x1085   :  { %v606_v34 = vmul.f32 %v1157_v31, %v605_v33 }
0x1087   :  { %v607_v35 = vadd.f32 %v1157_v31, %v606_v34 }
0x1089   :  { %v611_v0 = vsel %vm610_vm3, %v1157_v31, %v607_v35 }
0x108a   :  { %v616_v4 = vsel %vm613_vm4, %v615_v1, %v611_v0 }
0x108b   :  { %v619_v5 = vmul.f32 %v616_v4, %v564_v17  ;;  %v898_v17 = vld [vmem:[#allocation3 + $0x8] sm:$0xff] }
0x10e8   :  { %v622_v38 = vpop.permute.xlu1 %621 }
0x10e9   :  { %v624_v39 = vmul.f32 %v622_v38, %v616_v4 }
0x10eb   :  { %626 = vrot.lane.b32.xlu2 %v624_v39, %s1221_s10 }
0x1145   :  { %v627_v40 = vpop.permute.xlu2 %626 }
0x1146   :  { %v629_v41 = vadd.f32 %v627_v40, %v619_v5 }
0x1148   :  { %1158 = vtanh.f32 %v629_v41 }
0x114e   :  { %v1159_v42 = vpop.eup %1158 }
0x114f   :  { %632 = vrot.lane.b32.xlu0 %v1159_v42, %s1220_s9 }
0x11c1   :  { %v633_v43 = vpop.permute.xlu0 %632 }
0x11c2   :  { %v635_v44 = vmul.f32 %v633_v43, %v616_v4 }
0x11c4   :  { %637 = vrot.lane.b32.xlu1 %v635_v44, %s1221_s10 }
0x1236   :  { %v638_v45 = vpop.permute.xlu1 %637 }
0x1237   :  { %640 = vst.msk [vmem:[#allocation3 + $0x38] sm:$0xff] %vm120_vm6, %v638_v45  ;;  %1060 = vmatmul.msk.f32.vlgmr.msra.gmra.mxu3 %vm120_vm6, %v638_v45 }
0x1238   :  { %1081 = vmatpush.msra.mxu3 %v912_v11 }
0x123a   :  { %1083 = vmatpush.msra.mxu3 %v911_v12 }
0x123c   :  { %1085 = vmatpush.msra.mxu3 %v910_v13 }
0x123e   :  { %1087 = vmatpush.msra.mxu3 %v909_v14 }
0x12ba   :  { %v660_v46 = vpop.f32.mrf.mxu3 }
0x12bb   :  { %v661_v47 = vadd.f32 %v1318_v7, %v660_v46 }
0x12bd   :  { %1160 = vtanh.f32 %v661_v47  ;;  %v1061_v49 = vmul.f32 -1.442695, %v661_v47 }
0x12bf   :  { %1162 = vpow2.f32 %v1061_v49 }
0x12c3   :  { %v1161_v48 = vpop.eup %1160 }
0x12c4   :  { %685 = vrot.lane.b32.xlu2 %v1161_v48, %s1220_s9 }
0x12c5   :  { %v1163_v50 = vpop.eup %1162 }
0x12c6   :  { %v666_v51 = vadd.f32 1.0, %v1163_v50  ;;  %v901_v50 = vld [vmem:[#allocation3 + $0x20] sm:$0xff] }
0x12c8   :  { %1164 = vrcp.f32 %v666_v51  ;;  %v678_v57 = vand.u32 2147483648, %v666_v51  ;;  %vm672_vm7 = vweird.f32 %v666_v51  ;;  %v676_v58 = vand.u32 2147483647, %v666_v51 }
0x12ca   :  { %v679_v60 = vor.u32 1.1754944e-38, %v678_v57  ;;  %vm677_vm9 = vcmp.eq.f32.partialorder %v676_v58, 8.507059e+37 }
0x12ce   :  { %v1165_v52 = vpop.eup %1164 }
0x12cf   :  { %v668_v53 = vmul.f32 %v1165_v52, %v666_v51  ;;  %vm673_vm5 = vweird.f32 %v1165_v52  ;;  %v902_v51 = vld [vmem:[#allocation3 + $0x28] sm:$0xff] }
0x12d0   :  { %vm674_vm8 = vmor %vm672_vm7, %vm673_vm5 }
0x12d1   :  { %v669_v54 = vsub.f32 1.0, %v668_v53  ;;  %v904_v53 = vld [vmem:[#allocation3 + $0x38] sm:$0xff] }
0x12d3   :  { %v670_v55 = vmul.f32 %v1165_v52, %v669_v54 }
0x12d5   :  { %v671_v56 = vadd.f32 %v1165_v52, %v670_v55 }
0x12d7   :  { %v675_v59 = vsel %vm674_vm8, %v1165_v52, %v671_v56  ;;  %v903_v52 = vld [vmem:[#allocation3 + $0x30] sm:$0xff] }
0x12d8   :  { %v680_v62 = vsel %vm677_vm9, %v679_v60, %v675_v59 }
0x12d9   :  { %v683_v2 = vmul.f32 %v680_v62, %v629_v41 }
0x131e   :  { %v686_v61 = vpop.permute.xlu2 %685 }
0x131f   :  { %v688_v63 = vmul.f32 %v686_v61, %v680_v62 }
0x1321   :  { %690 = vrot.lane.b32.xlu0 %v688_v63, %s1221_s10 }
0x1393   :  { %v691_v3 = vpop.permute.xlu0 %690 }
0x1394   :  { %v1427_v6 = vadd.f32 %v691_v3, %v683_v2 }
0x1396   :  { %1166 = vtanh.f32 %v1427_v6 }
0x139c   :  { %v1167_v8 = vpop.eup %1166 }
0x139d   :  { %696 = vrot.lane.b32.xlu1 %v1167_v8, %s1220_s9 }
0x140f   :  { %v697_v9 = vpop.permute.xlu1 %696 }
0x1410   :  { %v699_v10 = vmul.f32 %v697_v9, %v680_v62 }
0x1412   :  { %701 = vrot.lane.b32.xlu2 %v699_v10, %s1221_s10 }
0x146c   :  { %v702_v15 = vpop.permute.xlu2 %701 }
0x146d   :  { %704 = vst.msk [vmem:[#allocation3 + $0x40] sm:$0xff] %vm120_vm6, %v702_v15  ;;  %1062 = vmatmul.msk.f32.vlgmr.msrb.gmra.mxu1 %vm120_vm6, %v702_v15 }
0x1475   :  { %1068 = vmatmul.msk.f32.vlgmr.msra.gmra.mxu1 %vm120_vm6, %v897_v16 }
0x147d   :  { %1069 = vmatmul.msk.f32.gmra.mxu1 %vm120_vm6, %v898_v17 }
0x1485   :  { %1070 = vmatmul.msk.f32.gmra.mxu1 %vm120_vm6, %v899_v18 }
0x148d   :  { %1071 = vmatmul.msk.f32.gmra.mxu1 %vm120_vm6, %v900_v19 }
0x14ea   :  { %v724_v20 = vpop.f32.mrf.mxu1 }
0x14eb   :  { %v725_v21 = vadd.f32 %v1318_v7, %v724_v20 }
0x14ed   :  { %1168 = vtanh.f32 %v725_v21  ;;  %v1063_v32 = vmul.f32 -1.442695, %v725_v21 }
0x14ef   :  { %1170 = vpow2.f32 %v1063_v32  ;;  %v1192_v32 = vld [vmem:[%s1504_s3] ss:$0 sm:$0xff]  ;;  %s1222_s3 = smov [#allocation4]  }
0x14f0   :  { %s1022_s8 = sshll.u32 %s1222_s3, 4  ;;  %s1023_s8 = int_to_ptr.vmem [resolvable:$true] %s1022_s8 }
0x14f2   :  { %v970_v23 = vpop.f32.mrf.mxu1 }
0x14f3   :  { %v1169_v24 = vpop.eup %1168  ;;  %v971_v25 = vadd.f32 %v1454_v22, %v970_v23 }
0x14f4   :  { %749 = vrot.lane.b32.xlu0 %v1169_v24, %s1220_s9 }
0x14f5   :  { %1006 = vst [vmem:[#allocation4] sm:$0xff] %v971_v25  ;;  %v1171_v33 = vpop.eup %1170 }
0x14f6   :  { %v730_v34 = vadd.f32 1.0, %v1171_v33 }
0x14f8   :  { %1172 = vrcp.f32 %v730_v34  ;;  %v742_v38 = vand.u32 2147483648, %v730_v34  ;;  %vm736_vm11 = vweird.f32 %v730_v34  ;;  %v740_v4 = vand.u32 2147483647, %v730_v34 }
0x14fa   :  { %v973_v26 = vpop.f32.mrf.mxu1  ;;  %v743_v5 = vor.u32 1.1754944e-38, %v742_v38  ;;  %vm741_vm13 = vcmp.eq.f32.partialorder %v740_v4, 8.507059e+37 }
0x14fb   :  { %v974_v27 = vadd.f32 %v1454_v22, %v973_v26 }
0x14fd   :  { %1007 = vst [vmem:[#allocation4 + $0x8] sm:$0xff] %v974_v27 }
0x14fe   :  { %v1173_v35 = vpop.eup %1172 }
0x14ff   :  { %v732_v36 = vmul.f32 %v1173_v35, %v730_v34  ;;  %vm737_vm10 = vweird.f32 %v1173_v35 }
0x1500   :  { %vm738_vm12 = vmor %vm736_vm11, %vm737_vm10 }
0x1501   :  { %v733_v37 = vsub.f32 1.0, %v732_v36 }
0x1502   :  { %v976_v28 = vpop.f32.mrf.mxu1 }
0x1503   :  { %v977_v29 = vadd.f32 %v1454_v22, %v976_v28  ;;  %v734_v0 = vmul.f32 %v1173_v35, %v733_v37  ;;  %v905_v28 = vld [vmem:[#allocation3 + $0x40] sm:$0xff] }
0x1505   :  { %1008 = vst [vmem:[#allocation4 + $0x10] sm:$0xff] %v977_v29  ;;  %v735_v1 = vadd.f32 %v1173_v35, %v734_v0 }
0x1507   :  { %v739_v39 = vsel %vm738_vm12, %v1173_v35, %v735_v1 }
0x1508   :  { %v744_v41 = vsel %vm741_vm13, %v743_v5, %v739_v39 }
0x1509   :  { %v747_v43 = vmul.f32 %v744_v41, %v1427_v6 }
0x150a   :  { %v979_v30 = vpop.f32.mrf.mxu1 }
0x150b   :  { %v980_v31 = vadd.f32 %v1454_v22, %v979_v30 }
0x150d   :  { %1009 = vst [vmem:[#allocation4 + $0x18] sm:$0xff] %v980_v31 }
0x1566   :  { %v750_v40 = vpop.permute.xlu0 %749 }
0x1567   :  { %v752_v42 = vmul.f32 %v750_v40, %v744_v41 }
0x1569   :  { %754 = vrot.lane.b32.xlu1 %v752_v42, %s1221_s10 }
0x15db   :  { %v755_v44 = vpop.permute.xlu1 %754 }
0x15dc   :  { %v757_v45 = vadd.f32 %v755_v44, %v747_v43 }
0x15de   :  { %1174 = vtanh.f32 %v757_v45 }
0x15e4   :  { %v1175_v46 = vpop.eup %1174 }
0x15e5   :  { %760 = vrot.lane.b32.xlu2 %v1175_v46, %s1220_s9 }
0x163f   :  { %v761_v47 = vpop.permute.xlu2 %760 }
0x1640   :  { %v763_v48 = vmul.f32 %v761_v47, %v744_v41 }
0x1642   :  { %765 = vrot.lane.b32.xlu0 %v763_v48, %s1221_s10 }
0x16b4   :  { %v766_v49 = vpop.permute.xlu0 %765 }
0x16b5   :  { %768 = vst.msk [vmem:[#allocation3 + $0x48] sm:$0xff] %vm120_vm6, %v766_v49  ;;  %1064 = vmatmul.msk.f32.vlgmr.msrb.gmra.mxu2 %vm120_vm6, %v766_v49 }
0x16bc   :  { %v906_v29 = vld [vmem:[#allocation3 + $0x48] sm:$0xff] }
0x16bd   :  { %1072 = vmatmul.msk.f32.vlgmr.msra.gmra.mxu2 %vm120_vm6, %v901_v50 }
0x16c5   :  { %1073 = vmatmul.msk.f32.gmra.mxu2 %vm120_vm6, %v902_v51 }
0x16cd   :  { %1074 = vmatmul.msk.f32.gmra.mxu2 %vm120_vm6, %v903_v52 }
0x16d5   :  { %1075 = vmatmul.msk.f32.gmra.mxu2 %vm120_vm6, %v904_v53 }
0x1738   :  { %v788_v54 = vpop.f32.mrf.mxu2 }
0x1739   :  { %v789_v55 = vadd.f32 %v1318_v7, %v788_v54 }
0x173b   :  { %1176 = vtanh.f32 %v789_v55  ;;  %v1065_v7 = vmul.f32 -1.442695, %v789_v55 }
0x173d   :  { %1178 = vpow2.f32 %v1065_v7 }
0x1740   :  { %v982_v56 = vpop.f32.mrf.mxu2 }
0x1741   :  { %v1177_v57 = vpop.eup %1176  ;;  %v983_v58 = vadd.f32 %v1454_v22, %v982_v56 }
0x1742   :  { %813 = vrot.lane.b32.xlu1 %v1177_v57, %s1220_s9 }
0x1743   :  { %1010 = vst [vmem:[#allocation4 + $0x20] sm:$0xff] %v983_v58  ;;  %v1179_v3 = vpop.eup %1178 }
0x1744   :  { %v794_v6 = vadd.f32 1.0, %v1179_v3 }
0x1746   :  { %1180 = vrcp.f32 %v794_v6  ;;  %v806_v13 = vand.u32 2147483648, %v794_v6  ;;  %vm800_vm15 = vweird.f32 %v794_v6  ;;  %v804_v14 = vand.u32 2147483647, %v794_v6 }
0x1748   :  { %v985_v59 = vpop.f32.mrf.mxu2  ;;  %v807_v16 = vor.u32 1.1754944e-38, %v806_v13  ;;  %vm805_vm1 = vcmp.eq.f32.partialorder %v804_v14, 8.507059e+37 }
0x1749   :  { %v986_v60 = vadd.f32 %v1454_v22, %v985_v59 }
0x174b   :  { %1011 = vst [vmem:[#allocation4 + $0x28] sm:$0xff] %v986_v60 }
0x174c   :  { %v1181_v8 = vpop.eup %1180 }
0x174d   :  { %v796_v9 = vmul.f32 %v1181_v8, %v794_v6  ;;  %vm801_vm14 = vweird.f32 %v1181_v8 }
0x174e   :  { %vm802_vm0 = vmor %vm800_vm15, %vm801_vm14 }
0x174f   :  { %v797_v10 = vsub.f32 1.0, %v796_v9 }
0x1750   :  { %v988_v61 = vpop.f32.mrf.mxu2 }
0x1751   :  { %v989_v62 = vadd.f32 %v1454_v22, %v988_v61  ;;  %v798_v11 = vmul.f32 %v1181_v8, %v797_v10 }
0x1753   :  { %1012 = vst [vmem:[#allocation4 + $0x30] sm:$0xff] %v989_v62  ;;  %v799_v12 = vadd.f32 %v1181_v8, %v798_v11 }
0x1755   :  { %v803_v15 = vsel %vm802_vm0, %v1181_v8, %v799_v12 }
0x1756   :  { %v808_v18 = vsel %vm805_vm1, %v807_v16, %v803_v15 }
0x1757   :  { %v811_v20 = vmul.f32 %v808_v18, %v757_v45 }
0x1758   :  { %v991_v63 = vpop.f32.mrf.mxu2 }
0x1759   :  { %v992_v2 = vadd.f32 %v1454_v22, %v991_v63 }
0x175b   :  { %1013 = vst [vmem:[#allocation4 + $0x38] sm:$0xff] %v992_v2 }
0x17b4   :  { %v814_v17 = vpop.permute.xlu1 %813 }
0x17b5   :  { %v816_v19 = vmul.f32 %v814_v17, %v808_v18 }
0x17b7   :  { %818 = vrot.lane.b32.xlu2 %v816_v19, %s1221_s10 }
0x1811   :  { %v819_v21 = vpop.permute.xlu2 %818 }
0x1812   :  { %v821_v23 = vadd.f32 %v819_v21, %v811_v20 }
0x1814   :  { %1182 = vtanh.f32 %v821_v23 }
0x181a   :  { %v1183_v24 = vpop.eup %1182 }
0x181b   :  { %824 = vrot.lane.b32.xlu0 %v1183_v24, %s1220_s9 }
0x188d   :  { %v825_v25 = vpop.permute.xlu0 %824 }
0x188e   :  { %v827_v26 = vmul.f32 %v825_v25, %v808_v18 }
0x1890   :  { %829 = vrot.lane.b32.xlu1 %v827_v26, %s1221_s10 }
0x1902   :  { %v830_v27 = vpop.permute.xlu1 %829 }
0x1903   :  { %832 = vst.msk [vmem:[#allocation3 + $0x50] sm:$0xff] %vm120_vm6, %v830_v27  ;;  %1066 = vmatmul.msk.f32.vlgmr.msrb.gmra.mxu3 %vm120_vm6, %v830_v27 }
0x190a   :  { %v907_v30 = vld [vmem:[#allocation3 + $0x50] sm:$0xff] }
0x190b   :  { %1076 = vmatmul.msk.f32.vlgmr.msra.gmra.mxu3 %vm120_vm6, %v905_v28 }
0x1913   :  { %1077 = vmatmul.msk.f32.gmra.mxu3 %vm120_vm6, %v906_v29 }
0x191b   :  { %1078 = vmatmul.msk.f32.gmra.mxu3 %vm120_vm6, %v907_v30 }
0x1986   :  { %v852_v31 = vpop.f32.mrf.mxu3 }
0x1987   :  { %v853_v33 = vadd.f32 %v1192_v32, %v852_v31 }
0x1989   :  { %1184 = vtanh.f32 %v853_v33  ;;  %v1067_v4 = vmul.f32 -1.442695, %v853_v33 }
0x198b   :  { %1186 = vpow2.f32 %v1067_v4 }
0x198e   :  { %v994_v34 = vpop.f32.mrf.mxu3 }
0x198f   :  { %v1185_v35 = vpop.eup %1184  ;;  %v995_v36 = vadd.f32 %v1454_v22, %v994_v34 }
0x1990   :  { %877 = vrot.lane.b32.xlu2 %v1185_v35, %s1220_s9 }
0x1991   :  { %1014 = vst [vmem:[#allocation4 + $0x40] sm:$0xff] %v995_v36  ;;  %v1187_v39 = vpop.eup %1186 }
0x1992   :  { %v858_v5 = vadd.f32 1.0, %v1187_v39 }
0x1994   :  { %1188 = vrcp.f32 %v858_v5  ;;  %v870_v45 = vand.u32 2147483648, %v858_v5  ;;  %vm864_vm3 = vweird.f32 %v858_v5  ;;  %v868_v46 = vand.u32 2147483647, %v858_v5 }
0x1996   :  { %v997_v37 = vpop.f32.mrf.mxu3  ;;  %v871_v48 = vor.u32 1.1754944e-38, %v870_v45  ;;  %vm869_vm5 = vcmp.eq.f32.partialorder %v868_v46, 8.507059e+37 }
0x1997   :  { %v998_v0 = vadd.f32 %v1454_v22, %v997_v37 }
0x1999   :  { %1015 = vst [vmem:[#allocation4 + $0x48] sm:$0xff] %v998_v0 }
0x199a   :  { %v1189_v40 = vpop.eup %1188 }
0x199b   :  { %v860_v41 = vmul.f32 %v1189_v40, %v858_v5  ;;  %vm865_vm2 = vweird.f32 %v1189_v40 }
0x199c   :  { %vm866_vm4 = vmor %vm864_vm3, %vm865_vm2 }
0x199d   :  { %v861_v42 = vsub.f32 1.0, %v860_v41 }
0x199e   :  { %v1000_v1 = vpop.f32.mrf.mxu3 }
0x199f   :  { %v1001_v38 = vadd.f32 %v1454_v22, %v1000_v1  ;;  %v862_v43 = vmul.f32 %v1189_v40, %v861_v42 }
0x19a1   :  { %1016 = vst [vmem:[#allocation4 + $0x50] sm:$0xff] %v1001_v38  ;;  %v863_v44 = vadd.f32 %v1189_v40, %v862_v43 }
0x19a3   :  { %v867_v47 = vsel %vm866_vm4, %v1189_v40, %v863_v44 }
0x19a4   :  { %v872_v50 = vsel %vm869_vm5, %v871_v48, %v867_v47 }
0x19a5   :  { %v875_v52 = vmul.f32 %v872_v50, %v821_v23 }
0x19ea   :  { %v878_v49 = vpop.permute.xlu2 %877 }
0x19eb   :  { %v880_v51 = vmul.f32 %v878_v49, %v872_v50 }
0x19ed   :  { %882 = vrot.lane.b32.xlu0 %v880_v51, %s1221_s10 }
0x1a5f   :  { %v883_v53 = vpop.permute.xlu0 %882 }
0x1a60   :  { %v885_v54 = vadd.f32 %v883_v53, %v875_v52 }
0x1a62   :  { %1190 = vtanh.f32 %v885_v54 }
0x1a68   :  { %v1191_v55 = vpop.eup %1190 }
0x1a69   :  { %888 = vrot.lane.b32.xlu1 %v1191_v55, %s1220_s9  ;;  %s1223_s9 = smov 128  }
0x1adb   :  { %v889_v56 = vpop.permute.xlu1 %888 }
0x1adc   :  { %v891_v57 = vmul.f32 %v889_v56, %v872_v50 }
0x1ade   :  { %893 = vrot.lane.b32.xlu2 %v891_v57, %s1221_s10  ;;  %s1224_s10 = smov 8  }
0x1b38   :  { %v894_v58 = vpop.permute.xlu2 %893 }
0x1b39   :  { %896 = vst.msk [vmem:[#allocation3 + $0x58] sm:$0xff] %vm120_vm6, %v894_v58 }
0x1b40   :  { %v908_v59 = vld [vmem:[#allocation3 + $0x58] sm:$0xff] }
0x1b41   :  { %1079 = vmatmul.msk.f32.gmra.mxu3 %vm120_vm6, %v908_v59 }
0x1bc4   :  { %v1003_v60 = vpop.f32.mrf.mxu3 }
0x1bc5   :  { %v1004_v61 = vadd.f32 %v1454_v22, %v1003_v60 }
0x1bc7   :  { %1017 = vst [vmem:[#allocation4 + $0x58] sm:$0xff] %v1004_v61 }
0x1bc8   :  { %1030 = dma.vmem_to_hbm [thread:$0]  %s1023_s8, 1536, %s1025_s13, [#allocation5], %s1223_s9, %s1223_s9, %s1224_s10  }
0x1bc9   :  { %1217 = dma.done.wait [#allocation5], 1536  }
0x1bca   :  { %1218 = vsyncadd [#allocation5], 4294965760 }
0x1bcb   :  { %1035 = vsyncpa [#allocation5], 1 }

</bundles_post_ra>
